<compile_context>
chip_gen: v6e
topology: v6e:2x2x1
jax: 0.10.0
libtpu: 0.0.40
codegen_flags: <defaults>
</compile_context>

<pallas_src>
import math

import numpy as np

import jax
import jax.numpy as jnp
from jax.experimental import pallas as pl
from jax.experimental.pallas import tpu as pltpu


# ---------------------------------------------------------------------------
# Fused kernel
# ---------------------------------------------------------------------------
def mlpwcnn_fused_kernel(x_ref,
                         cw1_ref, cb1_ref, cw2_ref, cb2_ref,
                         mw0_ref, mb0_ref, mw1_ref, mb1_ref,
                         mw2_ref, mb2_ref, mw3_ref, mb3_ref,
                         hw_ref, hb_ref,
                         o_ref):
    f32 = jnp.float32

    # Conv1d(1->16,k3,p1) + folded BN(16) + ReLU, as one banded matmul (cols = t*16+c).
    h = jnp.dot(x_ref[...].astype(jnp.bfloat16), cw1_ref[...],
                preferred_element_type=f32)
    h = jnp.maximum(h + cb1_ref[...], 0.0).astype(jnp.bfloat16)

    # Conv1d(16->32,k3,p1) + folded BN(32) + ReLU + flatten(NCL), as one banded matmul.
    # Output columns are already in torch.flatten order (c*L + t), lane-dense 32*L features.
    h = jnp.dot(h, cw2_ref[...], preferred_element_type=f32)
    h = jnp.maximum(h + cb2_ref[...], 0.0).astype(jnp.bfloat16)

    # 4 x [Linear + folded BN + ReLU]   (Dropout(p=0.2) is identity in eval mode)
    for w_ref, b_ref in ((mw0_ref, mb0_ref), (mw1_ref, mb1_ref),
                         (mw2_ref, mb2_ref), (mw3_ref, mb3_ref)):
        h = jnp.dot(h, w_ref[...], preferred_element_type=f32)
        h = jnp.maximum(h + b_ref[...], 0.0).astype(jnp.bfloat16)

    # Head Linear(256 -> 1): N=1 matmul wastes the MXU -> VPU multiply + XLU lane reduce (f32).
    o_ref[...] = (jnp.sum(h.astype(f32) * hw_ref[...], axis=-1, keepdims=True)
                  + hb_ref[...])


# ---------------------------------------------------------------------------
# Wrapper
# ---------------------------------------------------------------------------
def _round_up(n, m):
    return ((n + m - 1) // m) * m


def mlpwcnn_forward(x, F):
    """x: (B, L) float32  ->  (B, 1) float32.  F: prepared/folded parameter dict."""
    B, L = x.shape
    TB = min(128, _round_up(B, 8))           # batch tile: >=8 sublanes, VMEM-friendly
    B_pad = _round_up(B, TB)
    x_p = jnp.pad(x, ((0, B_pad - B), (0, 0))) if B_pad != B else x

    weights = [F["w1"], F["b1"], F["w2"], F["b2"],
               F["mw0"], F["mb0"], F["mw1"], F["mb1"],
               F["mw2"], F["mb2"], F["mw3"], F["mb3"],
               F["w4"], F["b4"]]

    flops = 2 * B_pad * int(F["w1"].size + F["w2"].size + F["mw0"].size
                            + F["mw1"].size + F["mw2"].size + F["mw3"].size
                            + F["w4"].size)
    bytes_accessed = int(x_p.size * 4 + B_pad * 4
                         + sum(int(w.size) * w.dtype.itemsize for w in weights))

    grid = (pl.cdiv(B_pad, TB),)
    in_specs = ([pl.BlockSpec((TB, L), lambda i: (i, 0))]
                + [pl.BlockSpec(w.shape, lambda i: (0, 0)) for w in weights])

    out = pl.pallas_call(
        mlpwcnn_fused_kernel,
        out_shape=jax.ShapeDtypeStruct((B_pad, 1), jnp.float32),
        grid=grid,
        in_specs=in_specs,
        out_specs=pl.BlockSpec((TB, 1), lambda i: (i, 0)),
        compiler_params=pltpu.CompilerParams(dimension_semantics=("parallel",)),
        cost_estimate=pl.CostEstimate(flops=flops, transcendentals=0,
                                      bytes_accessed=bytes_accessed),
    )(x_p, *weights)
    return out[:B]


# ---------------------------------------------------------------------------
# Host-side parameter folding (BN folds, banded conv matrices, bf16 MXU operands)
# ---------------------------------------------------------------------------
def prepare_fused_params(P, L):
    f32 = np.float32

    # Conv1 + BN1 folded
    w1 = np.asarray(P["c_w1"], f32).reshape(3, 16)
    s1 = np.asarray(P["c_s1"], f32).reshape(16)
    t1 = np.asarray(P["c_t1"], f32).reshape(16)
    w1f = w1 * s1[None, :]
    b1f = np.asarray(P["c_b1"], f32).reshape(16) * s1 + t1

    # Conv2 + BN2 folded
    w2 = np.asarray(P["c_w2"], f32)                       # (k, cin, cout)
    s2 = np.asarray(P["c_s2"], f32).reshape(32)
    t2 = np.asarray(P["c_t2"], f32).reshape(32)
    w2f = w2 * s2[None, None, :]
    b2f = np.asarray(P["c_b2"], f32).reshape(32) * s2 + t2

    # Banded (Toeplitz) conv matrices; 'same' padding encoded by omitting out-of-range taps.
    #   W1[t', t*16 + c]       = w1f[k, c]        with t' = t + k - 1
    #   W2[t'*16 + ci, co*L+t] = w2f[k, ci, co]   with t' = t + k - 1  (cols = torch flatten order)
    W1 = np.zeros((L, L, 16), f32)
    W2 = np.zeros((L, 16, 32, L), f32)
    for t in range(L):
        for k in range(3):
            tp = t + k - 1
            if 0 <= tp < L:
                W1[tp, t, :] = w1f[k]
                W2[tp, :, :, t] = w2f[k]
    W1x = W1.reshape(L, L * 16)
    W2x = W2.reshape(L * 16, 32 * L)
    b1big = np.tile(b1f, L)[None, :]                      # col t*16 + c
    b2big = np.repeat(b2f, L)[None, :]                    # col co*L + t

    F = {
        "w1": jnp.asarray(W1x, jnp.bfloat16), "b1": jnp.asarray(b1big, jnp.float32),
        "w2": jnp.asarray(W2x, jnp.bfloat16), "b2": jnp.asarray(b2big, jnp.float32),
    }
    # MLP hidden layers with BN folded into the Linear weights/biases
    for i in range(4):
        s = np.asarray(P[f"m_s{i}"], f32)
        t_ = np.asarray(P[f"m_t{i}"], f32)
        w = np.asarray(P[f"m_w{i}"], f32) * s
        b = np.asarray(P[f"m_b{i}"], f32) * s + t_
        F[f"mw{i}"] = jnp.asarray(w, jnp.bfloat16)
        F[f"mb{i}"] = jnp.asarray(b, jnp.float32)
    # Head (kept f32, used as a row vector for the VPU+reduce path)
    F["w4"] = jnp.asarray(np.asarray(P["m_w4"], f32).reshape(1, -1), jnp.float32)
    F["b4"] = jnp.asarray(np.asarray(P["m_b4"], f32).reshape(1, 1), jnp.float32)
    return F


# ---------------------------------------------------------------------------
# Deterministic parameter construction (synthetic, PyTorch-like shapes)
# ---------------------------------------------------------------------------
def _uniform(key, shape, fan_in):
    bound = 1.0 / math.sqrt(fan_in)
    return jax.random.uniform(key, shape, jnp.float32, -bound, bound)


def _bn_fold(key, c, shape):
    k1, k2, k3, k4 = jax.random.split(key, 4)
    gamma = jax.random.uniform(k1, (c,), jnp.float32, 0.5, 1.5)
    beta = 0.1 * jax.random.normal(k2, (c,), jnp.float32)
    r_mean = 0.1 * jax.random.normal(k3, (c,), jnp.float32)
    r_var = jax.random.uniform(k4, (c,), jnp.float32, 0.5, 1.5)
    scale = gamma / jnp.sqrt(r_var + 1e-5)
    shift = beta - r_mean * scale
    return scale.reshape(shape), shift.reshape(shape)


def init_params(key, L):
    keys = iter(jax.random.split(key, 40))
    P = {}
    # emb: Conv1d(1,16,3)+BN(16), Conv1d(16,32,3)+BN(32)   (weights stored as (k, Cin, Cout))
    P["c_w1"] = _uniform(next(keys), (3, 1, 16), 1 * 3)
    P["c_b1"] = _uniform(next(keys), (1, 1, 16), 1 * 3)
    P["c_s1"], P["c_t1"] = _bn_fold(next(keys), 16, (1, 1, 16))
    P["c_w2"] = _uniform(next(keys), (3, 16, 32), 16 * 3)
    P["c_b2"] = _uniform(next(keys), (1, 32), 16 * 3)
    P["c_s2"], P["c_t2"] = _bn_fold(next(keys), 32, (1, 32))
    # mlp: Linear sizes [32*L, 64, 256, 512, 256, 1], BN on the 4 hidden layers
    sizes = [32 * L, 64, 256, 512, 256, 1]
    for i in range(5):
        fi, fo = sizes[i], sizes[i + 1]
        P[f"m_w{i}"] = _uniform(next(keys), (fi, fo), fi)
        P[f"m_b{i}"] = _uniform(next(keys), (1, fo), fi)
        if i < 4:
            P[f"m_s{i}"], P[f"m_t{i}"] = _bn_fold(next(keys), fo, (1, fo))
    return P


# ---------------------------------------------------------------------------
# Pure-JAX reference (mirrors the PyTorch forward in eval mode, float32)
# ---------------------------------------------------------------------------
def reference_forward(x, P):
    B, L = x.shape
    xp = jnp.pad(x, ((0, 0), (1, 1)))[:, :, None]             # (B, L+2, 1)
    h1 = jnp.zeros((B, L, 16), jnp.float32) + P["c_b1"]
    for k in range(3):
        h1 = h1 + xp[:, k:k + L, :] * P["c_w1"][k]
    h1 = jnp.maximum(h1 * P["c_s1"] + P["c_t1"], 0.0)
    h1p = jnp.pad(h1, ((0, 0), (1, 1), (0, 0)))
    h2 = jnp.zeros((B, L, 32), jnp.float32) + P["c_b2"]
    for k in range(3):
        h2 = h2 + jnp.einsum("blc,co->blo", h1p[:, k:k + L, :], P["c_w2"][k])
    h2 = jnp.maximum(h2 * P["c_s2"] + P["c_t2"], 0.0)
    h = jnp.transpose(h2, (0, 2, 1)).reshape(B, 32 * L)       # torch.flatten on NCL
    for i in range(4):
        h = jnp.maximum((h @ P[f"m_w{i}"] + P[f"m_b{i}"]) * P[f"m_s{i}"] + P[f"m_t{i}"], 0.0)
    return h @ P["m_w4"] + P["m_b4"]


# ---------------------------------------------------------------------------
if __name__ == "__main__":
    B, L = 2, 16          # in_size = 16  ->  MLP input = 32 * 16 = 512
    key = jax.random.PRNGKey(0)
    kx, kp = jax.random.split(key)
    x = jax.random.normal(kx, (B, L), jnp.float32)
    params = init_params(kp, L)
    fused = prepare_fused_params(params, L)

    fwd = jax.jit(mlpwcnn_forward)
    out = jax.block_until_ready(fwd(x, fused))
    ref = jax.block_until_ready(reference_forward(x, params))

    assert out.shape == (B, 1), out.shape
    assert bool(jnp.all(jnp.isfinite(out)))
    assert bool(jnp.allclose(out, ref, rtol=2e-2, atol=2e-2)), (out, ref)
    print("KERNEL_OK")
</pallas_src>

<mosaic_0001>
module attributes {stable_mosaic.version = 11 : i64} {
  func.func @mlpwcnn_fused_kernel(%arg0: i32, %arg1: memref<8x16xf32, #tpu.memory_space<vmem>>, %arg2: memref<16x256xbf16, #tpu.memory_space<vmem>>, %arg3: memref<1x256xf32, #tpu.memory_space<vmem>>, %arg4: memref<256x512xbf16, #tpu.memory_space<vmem>>, %arg5: memref<1x512xf32, #tpu.memory_space<vmem>>, %arg6: memref<512x64xbf16, #tpu.memory_space<vmem>>, %arg7: memref<1x64xf32, #tpu.memory_space<vmem>>, %arg8: memref<64x256xbf16, #tpu.memory_space<vmem>>, %arg9: memref<1x256xf32, #tpu.memory_space<vmem>>, %arg10: memref<256x512xbf16, #tpu.memory_space<vmem>>, %arg11: memref<1x512xf32, #tpu.memory_space<vmem>>, %arg12: memref<512x256xbf16, #tpu.memory_space<vmem>>, %arg13: memref<1x256xf32, #tpu.memory_space<vmem>>, %arg14: memref<1x256xf32, #tpu.memory_space<vmem>>, %arg15: memref<1x1xf32, #tpu.memory_space<vmem>>, %arg16: memref<8x1xf32, #tpu.memory_space<vmem>>) attributes {dimension_semantics = [#tpu.dimension_semantics<parallel>], iteration_bounds = array<i64: 1>, scalar_prefetch = 0 : i64, scratch_operands = 0 : i64, tpu.core_type = #tpu.core_type<tc>, window_params = [{transform_indices = @transform_0, window_bounds = array<i64: 8, 16>}, {pipeline_mode = #tpu.pipeline_mode<synchronous>, transform_indices = @transform_1, window_bounds = array<i64: 16, 256>}, {pipeline_mode = #tpu.pipeline_mode<synchronous>, transform_indices = @transform_2, window_bounds = array<i64: 1, 256>}, {pipeline_mode = #tpu.pipeline_mode<synchronous>, transform_indices = @transform_3, window_bounds = array<i64: 256, 512>}, {pipeline_mode = #tpu.pipeline_mode<synchronous>, transform_indices = @transform_4, window_bounds = array<i64: 1, 512>}, {pipeline_mode = #tpu.pipeline_mode<synchronous>, transform_indices = @transform_5, window_bounds = array<i64: 512, 64>}, {pipeline_mode = #tpu.pipeline_mode<synchronous>, transform_indices = @transform_6, window_bounds = array<i64: 1, 64>}, {pipeline_mode = #tpu.pipeline_mode<synchronous>, transform_indices = @transform_7, window_bounds = array<i64: 64, 256>}, {pipeline_mode = #tpu.pipeline_mode<synchronous>, transform_indices = @transform_8, window_bounds = array<i64: 1, 256>}, {pipeline_mode = #tpu.pipeline_mode<synchronous>, transform_indices = @transform_9, window_bounds = array<i64: 256, 512>}, {pipeline_mode = #tpu.pipeline_mode<synchronous>, transform_indices = @transform_10, window_bounds = array<i64: 1, 512>}, {pipeline_mode = #tpu.pipeline_mode<synchronous>, transform_indices = @transform_11, window_bounds = array<i64: 512, 256>}, {pipeline_mode = #tpu.pipeline_mode<synchronous>, transform_indices = @transform_12, window_bounds = array<i64: 1, 256>}, {pipeline_mode = #tpu.pipeline_mode<synchronous>, transform_indices = @transform_13, window_bounds = array<i64: 1, 256>}, {pipeline_mode = #tpu.pipeline_mode<synchronous>, transform_indices = @transform_14, window_bounds = array<i64: 1, 1>}, {transform_indices = @transform_15, window_bounds = array<i64: 8, 1>}]} {
    %c0 = arith.constant 0 : index
    %c0_0 = arith.constant 0 : index
    %0 = vector.load %arg1[%c0, %c0_0] : memref<8x16xf32, #tpu.memory_space<vmem>>, vector<8x16xf32>
    %1 = arith.truncf %0 : vector<8x16xf32> to vector<8x16xbf16>
    %c0_1 = arith.constant 0 : index
    %c0_2 = arith.constant 0 : index
    %2 = vector.load %arg2[%c0_1, %c0_2] : memref<16x256xbf16, #tpu.memory_space<vmem>>, vector<16x256xbf16>
    %cst = arith.constant dense<0.000000e+00> : vector<8x256xf32>
    %3 = tpu.matmul %1, %2, %cst {dimension_numbers = #tpu.dot_dimension_numbers<[1], [0], [0], [1], [0, 0, 1, 1], [], []>} : vector<8x16xbf16>, vector<16x256xbf16>, vector<8x256xf32> -> vector<8x256xf32>
    %c0_3 = arith.constant 0 : index
    %c0_4 = arith.constant 0 : index
    %4 = vector.load %arg3[%c0_3, %c0_4] : memref<1x256xf32, #tpu.memory_space<vmem>>, vector<1x256xf32>
    %5 = vector.broadcast %4 : vector<1x256xf32> to vector<8x256xf32>
    %6 = arith.addf %3, %5 : vector<8x256xf32>
    %cst_5 = arith.constant 0.000000e+00 : f32
    %7 = vector.broadcast %cst_5 : f32 to vector<8x256xf32>
    %8 = arith.maximumf %6, %7 : vector<8x256xf32>
    %9 = arith.truncf %8 : vector<8x256xf32> to vector<8x256xbf16>
    %c0_6 = arith.constant 0 : index
    %c0_7 = arith.constant 0 : index
    %10 = vector.load %arg4[%c0_6, %c0_7] : memref<256x512xbf16, #tpu.memory_space<vmem>>, vector<256x512xbf16>
    %cst_8 = arith.constant dense<0.000000e+00> : vector<8x512xf32>
    %11 = tpu.matmul %9, %10, %cst_8 {dimension_numbers = #tpu.dot_dimension_numbers<[1], [0], [0], [1], [0, 0, 1, 1], [], []>} : vector<8x256xbf16>, vector<256x512xbf16>, vector<8x512xf32> -> vector<8x512xf32>
    %c0_9 = arith.constant 0 : index
    %c0_10 = arith.constant 0 : index
    %12 = vector.load %arg5[%c0_9, %c0_10] : memref<1x512xf32, #tpu.memory_space<vmem>>, vector<1x512xf32>
    %13 = vector.broadcast %12 : vector<1x512xf32> to vector<8x512xf32>
    %14 = arith.addf %11, %13 : vector<8x512xf32>
    %cst_11 = arith.constant 0.000000e+00 : f32
    %15 = vector.broadcast %cst_11 : f32 to vector<8x512xf32>
    %16 = arith.maximumf %14, %15 : vector<8x512xf32>
    %17 = arith.truncf %16 : vector<8x512xf32> to vector<8x512xbf16>
    %c0_12 = arith.constant 0 : index
    %c0_13 = arith.constant 0 : index
    %18 = vector.load %arg6[%c0_12, %c0_13] : memref<512x64xbf16, #tpu.memory_space<vmem>>, vector<512x64xbf16>
    %cst_14 = arith.constant dense<0.000000e+00> : vector<8x64xf32>
    %19 = tpu.matmul %17, %18, %cst_14 {dimension_numbers = #tpu.dot_dimension_numbers<[1], [0], [0], [1], [0, 0, 1, 1], [], []>} : vector<8x512xbf16>, vector<512x64xbf16>, vector<8x64xf32> -> vector<8x64xf32>
    %c0_15 = arith.constant 0 : index
    %c0_16 = arith.constant 0 : index
    %20 = vector.load %arg7[%c0_15, %c0_16] : memref<1x64xf32, #tpu.memory_space<vmem>>, vector<1x64xf32>
    %21 = vector.broadcast %20 : vector<1x64xf32> to vector<8x64xf32>
    %22 = arith.addf %19, %21 : vector<8x64xf32>
    %cst_17 = arith.constant 0.000000e+00 : f32
    %23 = vector.broadcast %cst_17 : f32 to vector<8x64xf32>
    %24 = arith.maximumf %22, %23 : vector<8x64xf32>
    %25 = arith.truncf %24 : vector<8x64xf32> to vector<8x64xbf16>
    %c0_18 = arith.constant 0 : index
    %c0_19 = arith.constant 0 : index
    %26 = vector.load %arg8[%c0_18, %c0_19] : memref<64x256xbf16, #tpu.memory_space<vmem>>, vector<64x256xbf16>
    %cst_20 = arith.constant dense<0.000000e+00> : vector<8x256xf32>
    %27 = tpu.matmul %25, %26, %cst_20 {dimension_numbers = #tpu.dot_dimension_numbers<[1], [0], [0], [1], [0, 0, 1, 1], [], []>} : vector<8x64xbf16>, vector<64x256xbf16>, vector<8x256xf32> -> vector<8x256xf32>
    %c0_21 = arith.constant 0 : index
    %c0_22 = arith.constant 0 : index
    %28 = vector.load %arg9[%c0_21, %c0_22] : memref<1x256xf32, #tpu.memory_space<vmem>>, vector<1x256xf32>
    %29 = vector.broadcast %28 : vector<1x256xf32> to vector<8x256xf32>
    %30 = arith.addf %27, %29 : vector<8x256xf32>
    %cst_23 = arith.constant 0.000000e+00 : f32
    %31 = vector.broadcast %cst_23 : f32 to vector<8x256xf32>
    %32 = arith.maximumf %30, %31 : vector<8x256xf32>
    %33 = arith.truncf %32 : vector<8x256xf32> to vector<8x256xbf16>
    %c0_24 = arith.constant 0 : index
    %c0_25 = arith.constant 0 : index
    %34 = vector.load %arg10[%c0_24, %c0_25] : memref<256x512xbf16, #tpu.memory_space<vmem>>, vector<256x512xbf16>
    %cst_26 = arith.constant dense<0.000000e+00> : vector<8x512xf32>
    %35 = tpu.matmul %33, %34, %cst_26 {dimension_numbers = #tpu.dot_dimension_numbers<[1], [0], [0], [1], [0, 0, 1, 1], [], []>} : vector<8x256xbf16>, vector<256x512xbf16>, vector<8x512xf32> -> vector<8x512xf32>
    %c0_27 = arith.constant 0 : index
    %c0_28 = arith.constant 0 : index
    %36 = vector.load %arg11[%c0_27, %c0_28] : memref<1x512xf32, #tpu.memory_space<vmem>>, vector<1x512xf32>
    %37 = vector.broadcast %36 : vector<1x512xf32> to vector<8x512xf32>
    %38 = arith.addf %35, %37 : vector<8x512xf32>
    %cst_29 = arith.constant 0.000000e+00 : f32
    %39 = vector.broadcast %cst_29 : f32 to vector<8x512xf32>
    %40 = arith.maximumf %38, %39 : vector<8x512xf32>
    %41 = arith.truncf %40 : vector<8x512xf32> to vector<8x512xbf16>
    %c0_30 = arith.constant 0 : index
    %c0_31 = arith.constant 0 : index
    %42 = vector.load %arg12[%c0_30, %c0_31] : memref<512x256xbf16, #tpu.memory_space<vmem>>, vector<512x256xbf16>
    %cst_32 = arith.constant dense<0.000000e+00> : vector<8x256xf32>
    %43 = tpu.matmul %41, %42, %cst_32 {dimension_numbers = #tpu.dot_dimension_numbers<[1], [0], [0], [1], [0, 0, 1, 1], [], []>} : vector<8x512xbf16>, vector<512x256xbf16>, vector<8x256xf32> -> vector<8x256xf32>
    %c0_33 = arith.constant 0 : index
    %c0_34 = arith.constant 0 : index
    %44 = vector.load %arg13[%c0_33, %c0_34] : memref<1x256xf32, #tpu.memory_space<vmem>>, vector<1x256xf32>
    %45 = vector.broadcast %44 : vector<1x256xf32> to vector<8x256xf32>
    %46 = arith.addf %43, %45 : vector<8x256xf32>
    %cst_35 = arith.constant 0.000000e+00 : f32
    %47 = vector.broadcast %cst_35 : f32 to vector<8x256xf32>
    %48 = arith.maximumf %46, %47 : vector<8x256xf32>
    %49 = arith.truncf %48 : vector<8x256xf32> to vector<8x256xbf16>
    %50 = arith.extf %49 : vector<8x256xbf16> to vector<8x256xf32>
    %c0_36 = arith.constant 0 : index
    %c0_37 = arith.constant 0 : index
    %51 = vector.load %arg14[%c0_36, %c0_37] : memref<1x256xf32, #tpu.memory_space<vmem>>, vector<1x256xf32>
    %52 = vector.broadcast %51 : vector<1x256xf32> to vector<8x256xf32>
    %53 = arith.mulf %50, %52 : vector<8x256xf32>
    %cst_38 = arith.constant dense<0.000000e+00> : vector<8xf32>
    %54 = vector.multi_reduction <add>, %53, %cst_38 [1] : vector<8x256xf32> to vector<8xf32>
    %55 = vector.shape_cast %54 : vector<8xf32> to vector<8x1xf32>
    %c0_39 = arith.constant 0 : index
    %c0_40 = arith.constant 0 : index
    %56 = vector.load %arg15[%c0_39, %c0_40] : memref<1x1xf32, #tpu.memory_space<vmem>>, vector<1x1xf32>
    %57 = vector.broadcast %56 : vector<1x1xf32> to vector<8x1xf32>
    %58 = arith.addf %55, %57 : vector<8x1xf32>
    %c0_41 = arith.constant 0 : index
    %c0_42 = arith.constant 0 : index
    %59 = vector.load %arg16[%c0_41, %c0_42] : memref<8x1xf32, #tpu.memory_space<vmem>>, vector<8x1xf32>
    tpu.vector_store %arg16[%c0_41, %c0_42], %58 {strides = array<i32>} : memref<8x1xf32, #tpu.memory_space<vmem>>, vector<8x1xf32>,
    return
  }
  func.func @transform_0(%arg0: i32) -> (i32, i32) {
    %c0_i32 = arith.constant 0 : i32
    %c0_i32_0 = arith.constant 0 : i32
    return %arg0, %c0_i32 : i32, i32
  }
  func.func @transform_1(%arg0: i32) -> (i32, i32) {
    %c0_i32 = arith.constant 0 : i32
    %c0_i32_0 = arith.constant 0 : i32
    %c0_i32_1 = arith.constant 0 : i32
    return %c0_i32, %c0_i32_0 : i32, i32
  }
  func.func @transform_2(%arg0: i32) -> (i32, i32) {
    %c0_i32 = arith.constant 0 : i32
    %c0_i32_0 = arith.constant 0 : i32
    %c0_i32_1 = arith.constant 0 : i32
    return %c0_i32, %c0_i32_0 : i32, i32
  }
  func.func @transform_3(%arg0: i32) -> (i32, i32) {
    %c0_i32 = arith.constant 0 : i32
    %c0_i32_0 = arith.constant 0 : i32
    %c0_i32_1 = arith.constant 0 : i32
    return %c0_i32, %c0_i32_0 : i32, i32
  }
  func.func @transform_4(%arg0: i32) -> (i32, i32) {
    %c0_i32 = arith.constant 0 : i32
    %c0_i32_0 = arith.constant 0 : i32
    %c0_i32_1 = arith.constant 0 : i32
    return %c0_i32, %c0_i32_0 : i32, i32
  }
  func.func @transform_5(%arg0: i32) -> (i32, i32) {
    %c0_i32 = arith.constant 0 : i32
    %c0_i32_0 = arith.constant 0 : i32
    %c0_i32_1 = arith.constant 0 : i32
    return %c0_i32, %c0_i32_0 : i32, i32
  }
  func.func @transform_6(%arg0: i32) -> (i32, i32) {
    %c0_i32 = arith.constant 0 : i32
    %c0_i32_0 = arith.constant 0 : i32
    %c0_i32_1 = arith.constant 0 : i32
    return %c0_i32, %c0_i32_0 : i32, i32
  }
  func.func @transform_7(%arg0: i32) -> (i32, i32) {
    %c0_i32 = arith.constant 0 : i32
    %c0_i32_0 = arith.constant 0 : i32
    %c0_i32_1 = arith.constant 0 : i32
    return %c0_i32, %c0_i32_0 : i32, i32
  }
  func.func @transform_8(%arg0: i32) -> (i32, i32) {
    %c0_i32 = arith.constant 0 : i32
    %c0_i32_0 = arith.constant 0 : i32
    %c0_i32_1 = arith.constant 0 : i32
    return %c0_i32, %c0_i32_0 : i32, i32
  }
  func.func @transform_9(%arg0: i32) -> (i32, i32) {
    %c0_i32 = arith.constant 0 : i32
    %c0_i32_0 = arith.constant 0 : i32
    %c0_i32_1 = arith.constant 0 : i32
    return %c0_i32, %c0_i32_0 : i32, i32
  }
  func.func @transform_10(%arg0: i32) -> (i32, i32) {
    %c0_i32 = arith.constant 0 : i32
    %c0_i32_0 = arith.constant 0 : i32
    %c0_i32_1 = arith.constant 0 : i32
    return %c0_i32, %c0_i32_0 : i32, i32
  }
  func.func @transform_11(%arg0: i32) -> (i32, i32) {
    %c0_i32 = arith.constant 0 : i32
    %c0_i32_0 = arith.constant 0 : i32
    %c0_i32_1 = arith.constant 0 : i32
    return %c0_i32, %c0_i32_0 : i32, i32
  }
  func.func @transform_12(%arg0: i32) -> (i32, i32) {
    %c0_i32 = arith.constant 0 : i32
    %c0_i32_0 = arith.constant 0 : i32
    %c0_i32_1 = arith.constant 0 : i32
    return %c0_i32, %c0_i32_0 : i32, i32
  }
  func.func @transform_13(%arg0: i32) -> (i32, i32) {
    %c0_i32 = arith.constant 0 : i32
    %c0_i32_0 = arith.constant 0 : i32
    %c0_i32_1 = arith.constant 0 : i32
    return %c0_i32, %c0_i32_0 : i32, i32
  }
  func.func @transform_14(%arg0: i32) -> (i32, i32) {
    %c0_i32 = arith.constant 0 : i32
    %c0_i32_0 = arith.constant 0 : i32
    %c0_i32_1 = arith.constant 0 : i32
    return %c0_i32, %c0_i32_0 : i32, i32
  }
  func.func @transform_15(%arg0: i32) -> (i32, i32) {
    %c0_i32 = arith.constant 0 : i32
    %c0_i32_0 = arith.constant 0 : i32
    return %arg0, %c0_i32 : i32, i32
  }
}

</mosaic_0001>

<bundles_post_ra>
// kernel: mlpwcnn_forward.1
= control target key start
LH: loop header
LB: loop body
LE: loop exit
PB: predicated region body
PF: predicated region fallthrough
CT: control target
= control target key end

     0   :  { %s3106_s0 = inlined_call_operand.vmem [shape: f32[8,16], index: 0, kind: input, shape index: {}]   ;;  %s3107_s1 = inlined_call_operand.vmem [shape: bf16[16,256], index: 1, kind: input, shape index: {}]   ;;  %s3108_s2 = inlined_call_operand.vmem [shape: f32[1,256], index: 2, kind: input, shape index: {}]   ;;  %s3109_s3 = inlined_call_operand.hbm [shape: bf16[256,512], index: 3, kind: input, shape index: {}]   ;;  %s3110_s4 = inlined_call_operand.vmem [shape: f32[1,512], index: 4, kind: input, shape index: {}]   ;;  %s3111_s5 = inlined_call_operand.vmem [shape: bf16[512,64], index: 5, kind: input, shape index: {}]   ;;  %s3112_s6 = inlined_call_operand.vmem [shape: f32[1,64], index: 6, kind: input, shape index: {}]   ;;  %s3113_s7 = inlined_call_operand.vmem [shape: bf16[64,256], index: 7, kind: input, shape index: {}]   ;;  %s3114_s8 = inlined_call_operand.vmem [shape: f32[1,256], index: 8, kind: input, shape index: {}]   ;;  %s3115_s9 = inlined_call_operand.hbm [shape: bf16[256,512], index: 9, kind: input, shape index: {}]   ;;  %s3116_s10 = inlined_call_operand.vmem [shape: f32[1,512], index: 10, kind: input, shape index: {}]   ;;  %s3117_s11 = inlined_call_operand.hbm [shape: bf16[512,256], index: 11, kind: input, shape index: {}]   ;;  %s3118_s12 = inlined_call_operand.vmem [shape: f32[1,256], index: 12, kind: input, shape index: {}]   ;;  %s3119_s13 = inlined_call_operand.vmem [shape: f32[1,256], index: 13, kind: input, shape index: {}]   ;;  %s3120_s14 = inlined_call_operand.<no memory space> [shape: f32[1,1], index: 14, kind: input, shape index: {}]   ;;  %s3121_s15 = inlined_call_operand.vmem [shape: f32[8,1], index: 15, kind: output, shape index: {}]  }
   0x1   :  { %v20_v0 = vstv %s3120_s14 }
   0x2   :  { %21 = vst [vmem:[#allocation2] sm:$0x1] %v20_v0 }
   0x3   :  { %22 = vsyncpa [#allocation4], 0 }
   0x4   :  { %23 = vsyncpa [#allocation6], 0  ;;  %s2821_s20 = smov [#allocation5]   ;;  %s2822_s22 = smov [#allocation3]  }
   0x5   :  { %s57_s21 = sshll.u32 %s2821_s20, 4  ;;  %s35_s23 = sshll.u32 %s2822_s22, 4  ;;  %s58_s21 = int_to_ptr.vmem [resolvable:$true] %s57_s21  ;;  %s36_s23 = int_to_ptr.vmem [resolvable:$true] %s35_s23 }
   0x6   :  { %s2765_s24 = scalar_lea.vmem %s58_s21, 8192  ;;  %p2770_p1 = scmp.lt.s32.totalorder %s58_s21, %s58_s21 }
   0x7   :  { %p2766_p0 = scmp.ne.s32.totalorder %s58_s21, %s2765_s24  ;;  %p2771_p2 = scmp.lt.s32.totalorder %s2765_s24, %s2765_s24 }
   0x9   :  { %p2772_p3 = por %p2771_p2, %p2770_p1 }
   0xb   :  { %p2773_p4 = pnand %p2772_p3, %p2766_p0 }
   0xd   :  { %2776 = shalt.err (!%p2773_p4)
}
   0xe   :  { %s2823_s25 = smov 256   ;;  %s2824_s26 = smov 16  }
   0xf   :  { %63 = dma.hbm_to_vmem [thread:$0]  %s3115_s9, 8192, %s58_s21, [#allocation6], %s2823_s25, %s2823_s25, %s2824_s26  }
  0x10   :  { %s2785_s28 = scalar_lea.vmem %s36_s23, 8192  ;;  %p2790_p6 = scmp.lt.s32.totalorder %s36_s23, %s36_s23 }
  0x11   :  { %p2786_p5 = scmp.ne.s32.totalorder %s36_s23, %s2785_s28  ;;  %p2791_p7 = scmp.lt.s32.totalorder %s2785_s28, %s2785_s28 }
  0x13   :  { %p2792_p8 = por %p2791_p7, %p2790_p6 }
  0x15   :  { %p2793_p9 = pnand %p2792_p8, %p2786_p5 }
  0x17   :  { %2796 = shalt.err (!%p2793_p9)
}
  0x18   :  { %41 = dma.hbm_to_vmem [thread:$0]  %s3109_s3, 8192, %s36_s23, [#allocation4], %s2823_s25, %s2823_s25, %s2824_s26  }
  0x19   :  { %s2825_s16 = smov [#allocation7]  }
  0x1a   :  { %s71_s17 = sshll.u32 %s2825_s16, 4  ;;  %s72_s17 = int_to_ptr.vmem [resolvable:$true] %s71_s17 }
  0x1b   :  { %s2805_s18 = scalar_lea.vmem %s72_s17, 8192  ;;  %p2810_p11 = scmp.lt.s32.totalorder %s72_s17, %s72_s17 }
  0x1c   :  { %p2806_p10 = scmp.ne.s32.totalorder %s72_s17, %s2805_s18  ;;  %p2811_p12 = scmp.lt.s32.totalorder %s2805_s18, %s2805_s18 }
  0x1e   :  { %p2812_p13 = por %p2811_p12, %p2810_p11 }
  0x20   :  { %p2813_p0 = pnand %p2812_p13, %p2806_p10 }
  0x22   :  { %2816 = shalt.err (!%p2813_p0)
}
  0x23   :  { %s2826_s9 = smov 128   ;;  %s2827_s19 = smov 8  }
  0x24   :  { %77 = dma.hbm_to_vmem [thread:$0]  %s3117_s11, 8192, %s72_s17, [#allocation6], %s2826_s9, %s2826_s9, %s2827_s19  }
  0x25   :  { %2817 = dma.done.wait [#allocation4], 8192  }
  0x26   :  { %2818 = vsyncadd [#allocation4], 4294959104 }
  0x27   :  { %2819 = dma.done.wait [#allocation6], 16384  }
  0x28   :  { %2820 = vsyncadd [#allocation6], 4294950912  ;;  %v2828_v1 = vmov 0   ;;  %v2422_v2 = vld [vmem:[%s3107_s1 + $0x4] ss:$8 sps:$4 sm:$0xff]   ;;  %vm120_vm0 = vcmask 130048  }
  0x29   :  { %156 = vmatprep.mubr.bf16.mxu0 %v2828_v1  ;;  %v2424_v3 = vld [vmem:[%s3107_s1] ss:$8 sps:$4 sm:$0xff]   ;;  %138 = vmatprep.subr.bf16.mxu0 %v2422_v2  ;;  %vm1070_vm1 = vcmask 523264   ;;  %vm2124_vm2 = vcmask 7168  }
  0x2a   :  { %v94_v4 = vld [vmem:[%s3106_s0] sm:$0xff]  ;;  %139 = vmatpush1.bf16.msra.mxu0 %v2424_v3  ;;  %v2427_v7 = vld [vmem:[#allocation3 + $0xe8] ss:$16 sps:$4 sm:$0xff]  }
  0x2b   :  { %v95_v5 = vpack.c.bf16 %v94_v4, %v94_v4  ;;  %v2425_v6 = vld [vmem:[#allocation3 + $0xe4] ss:$16 sps:$4 sm:$0xff]   ;;  %v2429_v8 = vld [vmem:[#allocation3 + $0xec] ss:$16 sps:$4 sm:$0xff]   ;;  %v2430_v9 = vld [vmem:[#allocation3 + $0xe0] ss:$16 sps:$4 sm:$0xff]  }
  0x2c   :  { %575 = vmatprep.subr.bf16.mxu1 %v2425_v6  ;;  %616 = vmatprep.subr.bf16.mxu0 %v2429_v8  ;;  %v2431_v10 = vld [vmem:[#allocation3 + $0xc4] ss:$16 sps:$4 sm:$0xff]   ;;  %v2433_v11 = vld [vmem:[#allocation3 + $0xc8] ss:$16 sps:$4 sm:$0xff]   ;;  %v2435_v12 = vld [vmem:[#allocation3 + $0xcc] ss:$16 sps:$4 sm:$0xff]  }
  0x2d   :  { %2134 = vmatmul.mubr.msk.bf16.vlgmr.msra.gmra.mxu0 %vm120_vm0, %v95_v5  ;;  %576 = vmatpush1.bf16.msra.mxu1 %v2430_v9  ;;  %v2436_v13 = vld [vmem:[#allocation3 + $0xc0] ss:$16 sps:$4 sm:$0xff]   ;;  %v2437_v14 = vld [vmem:[#allocation3 + $0xa4] ss:$16 sps:$4 sm:$0xff]   ;;  %v2441_v15 = vld [vmem:[#allocation3 + $0xac] ss:$16 sps:$4 sm:$0xff]   ;;  %v100_v9 = vlaneseq }
  0x2e   :  { %617 = vmatpush1.bf16.msra.mxu0 %v2427_v7  ;;  %577 = vmatprep.subr.bf16.mxu1 %v2431_v10  ;;  %v2442_v16 = vld [vmem:[#allocation3 + $0xa0] ss:$16 sps:$4 sm:$0xff]   ;;  %v2439_v17 = vld [vmem:[#allocation3 + $0xa8] ss:$16 sps:$4 sm:$0xff]   ;;  %v2443_v18 = vld [vmem:[#allocation3 + $0x84] ss:$16 sps:$4 sm:$0xff]  }
  0x2f   :  { %618 = vmatprep.subr.bf16.mxu0 %v2435_v12  ;;  %v2447_v19 = vld [vmem:[#allocation3 + $0x8c] ss:$16 sps:$4 sm:$0xff]   ;;  %v2445_v20 = vld [vmem:[#allocation3 + $0x88] ss:$16 sps:$4 sm:$0xff]   ;;  %v2448_v21 = vld [vmem:[#allocation3 + $0x80] ss:$16 sps:$4 sm:$0xff]  }
  0x30   :  { %v2449_v22 = vld [vmem:[#allocation3 + $0x64] ss:$16 sps:$4 sm:$0xff]   ;;  %v2453_v23 = vld [vmem:[#allocation3 + $0x6c] ss:$16 sps:$4 sm:$0xff]   ;;  %v2454_v24 = vld [vmem:[#allocation3 + $0x60] ss:$16 sps:$4 sm:$0xff]  }
  0x31   :  { %578 = vmatpush1.bf16.msra.mxu1 %v2436_v13  ;;  %v2451_v25 = vld [vmem:[#allocation3 + $0x68] ss:$16 sps:$4 sm:$0xff]   ;;  %v2455_v26 = vld [vmem:[#allocation3 + $0x44] ss:$16 sps:$4 sm:$0xff]   ;;  %v2459_v27 = vld [vmem:[#allocation3 + $0x4c] ss:$16 sps:$4 sm:$0xff]  }
  0x32   :  { %619 = vmatpush1.bf16.msra.mxu0 %v2433_v11  ;;  %579 = vmatprep.subr.bf16.mxu1 %v2437_v14  ;;  %v2457_v28 = vld [vmem:[#allocation3 + $0x48] ss:$16 sps:$4 sm:$0xff]   ;;  %v2460_v29 = vld [vmem:[#allocation3 + $0x40] ss:$16 sps:$4 sm:$0xff]   ;;  %v2461_v30 = vld [vmem:[#allocation3 + $0x24] ss:$16 sps:$4 sm:$0xff]  }
  0x33   :  { %620 = vmatprep.subr.bf16.mxu0 %v2441_v15  ;;  %v2465_v31 = vld [vmem:[#allocation3 + $0x2c] ss:$16 sps:$4 sm:$0xff]   ;;  %v2466_v32 = vld [vmem:[#allocation3 + $0x20] ss:$16 sps:$4 sm:$0xff]   ;;  %v2463_v33 = vld [vmem:[#allocation3 + $0x28] ss:$16 sps:$4 sm:$0xff]  }
  0x34   :  { %v2467_v34 = vld [vmem:[#allocation3 + $0x4] ss:$16 sps:$4 sm:$0xff]   ;;  %v2471_v35 = vld [vmem:[#allocation3 + $0xc] ss:$16 sps:$4 sm:$0xff]   ;;  %v2469_v36 = vld [vmem:[#allocation3 + $0x8] ss:$16 sps:$4 sm:$0xff]  }
  0x35   :  { %580 = vmatpush1.bf16.msra.mxu1 %v2442_v16  ;;  %v2472_v37 = vld [vmem:[#allocation3] ss:$16 sps:$4 sm:$0xff]   ;;  %v2473_v38 = vld [vmem:[#allocation3 + $0x1e4] ss:$16 sps:$4 sm:$0xff]   ;;  %v2477_v39 = vld [vmem:[#allocation3 + $0x1ec] ss:$16 sps:$4 sm:$0xff]  }
  0x36   :  { %621 = vmatpush1.bf16.msra.mxu0 %v2439_v17  ;;  %581 = vmatprep.subr.bf16.mxu1 %v2443_v18  ;;  %v2478_v40 = vld [vmem:[#allocation3 + $0x1e0] ss:$16 sps:$4 sm:$0xff]   ;;  %v2475_v41 = vld [vmem:[#allocation3 + $0x1e8] ss:$16 sps:$4 sm:$0xff]   ;;  %v2479_v42 = vld [vmem:[#allocation3 + $0x1c4] ss:$16 sps:$4 sm:$0xff]  }
  0x37   :  { %622 = vmatprep.subr.bf16.mxu0 %v2447_v19  ;;  %v2483_v43 = vld [vmem:[#allocation3 + $0x1cc] ss:$16 sps:$4 sm:$0xff]   ;;  %v2481_v44 = vld [vmem:[#allocation3 + $0x1c8] ss:$16 sps:$4 sm:$0xff]   ;;  %v2484_v45 = vld [vmem:[#allocation3 + $0x1c0] ss:$16 sps:$4 sm:$0xff]  }
  0x38   :  { %v2485_v46 = vld [vmem:[#allocation3 + $0x1a4] ss:$16 sps:$4 sm:$0xff]   ;;  %v2489_v47 = vld [vmem:[#allocation3 + $0x1ac] ss:$16 sps:$4 sm:$0xff]   ;;  %v2490_v48 = vld [vmem:[#allocation3 + $0x1a0] ss:$16 sps:$4 sm:$0xff]  }
  0x39   :  { %582 = vmatpush1.bf16.msra.mxu1 %v2448_v21  ;;  %v2487_v49 = vld [vmem:[#allocation3 + $0x1a8] ss:$16 sps:$4 sm:$0xff]   ;;  %v2491_v50 = vld [vmem:[#allocation3 + $0x184] ss:$16 sps:$4 sm:$0xff]   ;;  %v2495_v51 = vld [vmem:[#allocation3 + $0x18c] ss:$16 sps:$4 sm:$0xff]  }
  0x3a   :  { %623 = vmatpush1.bf16.msra.mxu0 %v2445_v20  ;;  %583 = vmatprep.subr.bf16.mxu1 %v2449_v22  ;;  %v2496_v52 = vld [vmem:[#allocation3 + $0x180] ss:$16 sps:$4 sm:$0xff]   ;;  %v2493_v53 = vld [vmem:[#allocation3 + $0x188] ss:$16 sps:$4 sm:$0xff]   ;;  %v2497_v54 = vld [vmem:[#allocation3 + $0x164] ss:$16 sps:$4 sm:$0xff]  }
  0x3b   :  { %624 = vmatprep.subr.bf16.mxu0 %v2453_v23  ;;  %v2501_v55 = vld [vmem:[#allocation3 + $0x16c] ss:$16 sps:$4 sm:$0xff]   ;;  %v2502_v56 = vld [vmem:[#allocation3 + $0x160] ss:$16 sps:$4 sm:$0xff]   ;;  %v2499_v57 = vld [vmem:[#allocation3 + $0x168] ss:$16 sps:$4 sm:$0xff]  }
  0x3c   :  { %v2503_v58 = vld [vmem:[#allocation3 + $0x144] ss:$16 sps:$4 sm:$0xff]   ;;  %v2507_v59 = vld [vmem:[#allocation3 + $0x14c] ss:$16 sps:$4 sm:$0xff]   ;;  %v2508_v60 = vld [vmem:[#allocation3 + $0x140] ss:$16 sps:$4 sm:$0xff]  }
  0x3d   :  { %584 = vmatpush1.bf16.msra.mxu1 %v2454_v24  ;;  %v2505_v61 = vld [vmem:[#allocation3 + $0x148] ss:$16 sps:$4 sm:$0xff]   ;;  %v2509_v62 = vld [vmem:[#allocation3 + $0x124] ss:$16 sps:$4 sm:$0xff]   ;;  %v2513_v63 = vld [vmem:[#allocation3 + $0x12c] ss:$16 sps:$4 sm:$0xff]  }
  0x3e   :  { %625 = vmatpush1.bf16.msra.mxu0 %v2451_v25  ;;  %585 = vmatprep.subr.bf16.mxu1 %v2455_v26  ;;  %v2511_v0 = vld [vmem:[#allocation3 + $0x128] ss:$16 sps:$4 sm:$0xff]   ;;  %v2514_v2 = vld [vmem:[#allocation3 + $0x120] ss:$16 sps:$4 sm:$0xff]   ;;  %v2515_v3 = vld [vmem:[#allocation3 + $0x104] ss:$16 sps:$4 sm:$0xff]  }
  0x3f   :  { %626 = vmatprep.subr.bf16.mxu0 %v2459_v27  ;;  %v2519_v4 = vld [vmem:[#allocation3 + $0x10c] ss:$16 sps:$4 sm:$0xff]   ;;  %v2517_v5 = vld [vmem:[#allocation3 + $0x108] ss:$16 sps:$4 sm:$0xff]   ;;  %v2520_v6 = vld [vmem:[#allocation3 + $0x100] ss:$16 sps:$4 sm:$0xff]  }
  0x40   :  { %v2521_v7 = vld [vmem:[%s3111_s5 + $0x78] sm:$0xff]   ;;  %v2937_v10 = vshrl.u32 %v100_v9, 7  ;;  %v98_v12 = vld [vmem:[%s3108_s2] sm:$0x3] }
  0x41   :  { %586 = vmatpush1.bf16.msra.mxu1 %v2460_v29  ;;  %v2522_v8 = vld [vmem:[%s3111_s5 + $0xf8] sm:$0xff]   ;;  %v2526_v29 = vld [vmem:[%s3111_s5 + $0xf0] sm:$0xff]  }
  0x42   :  { %627 = vmatpush1.bf16.msra.mxu0 %v2457_v28  ;;  %587 = vmatprep.subr.bf16.mxu1 %v2461_v30  ;;  %v2940_v11 = vsub.s32 0, %v2937_v10  ;;  %v2946_v13 = vsub.s32 1, %v2937_v10  ;;  %v2523_v25 = vld [vmem:[%s3111_s5 + $0x38] sm:$0xff]   ;;  %v2525_v28 = vld [vmem:[%s3111_s5 + $0x70] sm:$0xff]  }
  0x43   :  { %628 = vmatprep.subr.bf16.mxu0 %v2465_v31  ;;  %v2524_v26 = vld [vmem:[%s3111_s5 + $0xb8] sm:$0xff]   ;;  %v2527_v30 = vld [vmem:[%s3111_s5 + $0x30] sm:$0xff]  }
  0x44   :  { %v103_v14 = vrot.slane %v98_v12, %v2940_v11  ;;  %v107_v15 = vrot.slane %v98_v12, %v2946_v13  ;;  %v2528_v31 = vld [vmem:[%s3111_s5 + $0xb0] sm:$0xff]  }
  0x45   :  { %588 = vmatpush1.bf16.msra.mxu1 %v2466_v32  ;;  %v2529_v32 = vld [vmem:[%s3111_s5 + $0x68] sm:$0xff]  }
  0x46   :  { %629 = vmatpush1.bf16.msra.mxu0 %v2463_v33  ;;  %589 = vmatprep.subr.bf16.mxu1 %v2467_v34  ;;  %v2530_v33 = vld [vmem:[%s3111_s5 + $0xe8] sm:$0xff]  }
  0x47   :  { %630 = vmatprep.subr.bf16.mxu0 %v2471_v35  ;;  %v2531_v34 = vld [vmem:[%s3111_s5 + $0x28] sm:$0xff]  }
  0x48   :  { %v2532_v35 = vld [vmem:[%s3111_s5 + $0xa8] sm:$0xff]  }
  0x49   :  { %590 = vmatpush1.bf16.msra.mxu1 %v2472_v37  ;;  %v2534_v37 = vld [vmem:[%s3111_s5 + $0xe0] sm:$0xff]  }
  0x4a   :  { %631 = vmatpush1.bf16.msra.mxu0 %v2469_v36  ;;  %591 = vmatprep.subr.bf16.mxu1 %v2473_v38  ;;  %v2533_v36 = vld [vmem:[%s3111_s5 + $0x60] sm:$0xff]  }
  0x4b   :  { %632 = vmatprep.subr.bf16.mxu0 %v2477_v39  ;;  %v2535_v38 = vld [vmem:[%s3111_s5 + $0x20] sm:$0xff]  }
  0x4c   :  { %v2536_v39 = vld [vmem:[%s3111_s5 + $0xa0] sm:$0xff]  }
  0x4d   :  { %592 = vmatpush2.bf16.msra.mxu1 %v2478_v40  ;;  %v2537_v40 = vld [vmem:[%s3111_s5 + $0x58] sm:$0xff]  }
  0x4e   :  { %633 = vmatpush2.bf16.msra.mxu0 %v2475_v41  ;;  %593 = vmatprep.subr.bf16.mxu1 %v2479_v42  ;;  %v2538_v41 = vld [vmem:[%s3111_s5 + $0xd8] sm:$0xff]  }
  0x4f   :  { %634 = vmatprep.subr.bf16.mxu0 %v2483_v43  ;;  %v2539_v42 = vld [vmem:[%s3111_s5 + $0x18] sm:$0xff]  }
  0x50   :  { %v2540_v43 = vld [vmem:[%s3111_s5 + $0x98] sm:$0xff]  }
  0x51   :  { %594 = vmatpush2.bf16.msra.mxu1 %v2484_v45  ;;  %v2542_v45 = vld [vmem:[%s3111_s5 + $0xd0] sm:$0xff]  }
  0x52   :  { %635 = vmatpush2.bf16.msra.mxu0 %v2481_v44  ;;  %595 = vmatprep.subr.bf16.mxu1 %v2485_v46  ;;  %v2541_v44 = vld [vmem:[%s3111_s5 + $0x50] sm:$0xff]  }
  0x53   :  { %636 = vmatprep.subr.bf16.mxu0 %v2489_v47  ;;  %v2543_v46 = vld [vmem:[%s3111_s5 + $0x10] sm:$0xff]  }
  0x54   :  { %v2544_v47 = vld [vmem:[%s3111_s5 + $0x90] sm:$0xff]  }
  0x55   :  { %596 = vmatpush2.bf16.msra.mxu1 %v2490_v48  ;;  %v2545_v48 = vld [vmem:[%s3111_s5 + $0x48] sm:$0xff]  }
  0x56   :  { %637 = vmatpush2.bf16.msra.mxu0 %v2487_v49  ;;  %597 = vmatprep.subr.bf16.mxu1 %v2491_v50  ;;  %v2546_v49 = vld [vmem:[%s3111_s5 + $0xc8] sm:$0xff]  }
  0x57   :  { %638 = vmatprep.subr.bf16.mxu0 %v2495_v51  ;;  %v2547_v50 = vld [vmem:[%s3111_s5 + $0x8] sm:$0xff]  }
  0x58   :  { %v2548_v51 = vld [vmem:[%s3111_s5 + $0x88] sm:$0xff]  }
  0x59   :  { %598 = vmatpush2.bf16.msra.mxu1 %v2496_v52  ;;  %v2549_v52 = vld [vmem:[%s3111_s5 + $0x40] sm:$0xff]  }
  0x5a   :  { %639 = vmatpush2.bf16.msra.mxu0 %v2493_v53  ;;  %599 = vmatprep.subr.bf16.mxu1 %v2497_v54  ;;  %v2550_v53 = vld [vmem:[%s3111_s5 + $0xc0] sm:$0xff]  }
  0x5b   :  { %640 = vmatprep.subr.bf16.mxu0 %v2501_v55  ;;  %v2551_v54 = vld [vmem:[%s3111_s5] sm:$0xff]  }
  0x5c   :  { %v2552_v55 = vld [vmem:[%s3111_s5 + $0x80] sm:$0xff]  }
  0x5d   :  { %600 = vmatpush2.bf16.msra.mxu1 %v2502_v56  ;;  %v2555_v56 = vld [vmem:[%s3113_s7 + $0x34] ss:$8 sps:$4 sm:$0xff]  }
  0x5e   :  { %641 = vmatpush2.bf16.msra.mxu0 %v2499_v57  ;;  %601 = vmatprep.subr.bf16.mxu1 %v2503_v58  ;;  %v245_v57 = vsub.s32 2, %v2937_v10  ;;  %v233_v58 = vld [vmem:[%s3110_s4] sm:$0xf] }
  0x5f   :  { %642 = vmatprep.subr.bf16.mxu0 %v2507_v59  ;;  %v249_v59 = vsub.s32 3, %v2937_v10 }
  0x61   :  { %602 = vmatpush2.bf16.msra.mxu1 %v2508_v60  ;;  %v238_v60 = vrot.slane %v233_v58, %v2940_v11 }
  0x62   :  { %643 = vmatpush2.bf16.msra.mxu0 %v2505_v61  ;;  %603 = vmatprep.subr.bf16.mxu1 %v2509_v62  ;;  %v246_v61 = vrot.slane %v233_v58, %v245_v57  ;;  %v242_v62 = vrot.slane %v233_v58, %v2946_v13 }
  0x63   :  { %644 = vmatprep.subr.bf16.mxu0 %v2513_v63  ;;  %v250_v63 = vrot.slane %v233_v58, %v249_v59  ;;  %v2645_v58 = vld [vmem:[#allocation5 + $0x144] ss:$16 sps:$4 sm:$0xff]  }
  0x65   :  { %604 = vmatpush2.bf16.msra.mxu1 %v2514_v2 }
  0x66   :  { %645 = vmatpush2.bf16.msra.mxu0 %v2511_v0  ;;  %605 = vmatprep.subr.bf16.mxu1 %v2515_v3 }
  0x67   :  { %646 = vmatprep.subr.bf16.mxu0 %v2519_v4 }
  0x69   :  { %606 = vmatpush2.bf16.msra.mxu1 %v2520_v6 }
  0x6a   :  { %647 = vmatpush2.bf16.msra.mxu0 %v2517_v5  ;;  %2370 = vmatprep.subr.bf16.mxu1 %v2521_v7 }
  0x6b   :  { %2392 = vmatprep.subr.bf16.mxu0 %v2522_v8 }
  0xed   :  { %v158_v16 = vpop.f32.mrf.mxu0 }
  0xee   :  { %v159_v17 = vadd.f32 %v158_v16, %v103_v14 }
  0xef   :  { %v160_v18 = vpop.f32.mrf.mxu0 }
  0xf0   :  { %v161_v19 = vadd.f32 %v160_v18, %v107_v15  ;;  %v165_v20 = vmax.f32 %v159_v17, 0.0 }
  0xf1   :  { %v162_v21 = vpop.f32.mrf.mxu0 }
  0xf2   :  { %v166_v22 = vmax.f32 %v161_v19, 0.0  ;;  %v167_v27 = vpack.c.bf16 %v165_v20, %v165_v20 }
  0xf3   :  { %v163_v23 = vpop.f32.mrf.mxu0 }
  0xf4   :  { %v168_v24 = vpack.c.bf16 %v166_v22, %v166_v22  ;;  %v2553_v22 = vld [vmem:[%s3113_s7 + $0x30] ss:$8 sps:$4 sm:$0xff]  }
  0xf6   :  { %607 = vmatprep.mubr.bf16.mxu1 %v168_v24  ;;  %648 = vmatprep.mubr.bf16.mxu0 %v168_v24 }
  0xf7   :  { %608 = vmatmul.mubr.bf16.vlgmr.msra.gmra.mxu1 %v167_v27  ;;  %649 = vmatmul.mubr.bf16.vlgmr.msra.gmra.mxu0 %v167_v27  ;;  %v2561_v27 = vld [vmem:[%s3113_s7 + $0x14] ss:$8 sps:$4 sm:$0xff]  }
  0xf8   :  { %2371 = vmatpush3.bf16.msra.mxu1 %v2523_v25  ;;  %2393 = vmatpush3.bf16.msra.mxu0 %v2524_v26  ;;  %v2558_v25 = vld [vmem:[%s3113_s7 + $0x24] ss:$8 sps:$4 sm:$0xff]   ;;  %v2556_v26 = vld [vmem:[%s3113_s7 + $0x20] ss:$8 sps:$4 sm:$0xff]  }
  0xf9   :  { %2372 = vmatprep.subr.bf16.mxu1 %v2525_v28  ;;  %2394 = vmatprep.subr.bf16.mxu0 %v2526_v29  ;;  %v2559_v28 = vld [vmem:[%s3113_s7 + $0x10] ss:$8 sps:$4 sm:$0xff]   ;;  %v2562_v29 = vld [vmem:[%s3113_s7] ss:$8 sps:$4 sm:$0xff]  }
  0xfc   :  { %2373 = vmatpush3.bf16.msra.mxu1 %v2527_v30  ;;  %2395 = vmatpush3.bf16.msra.mxu0 %v2528_v31  ;;  %v2565_v30 = vld [vmem:[#allocation5 + $0xe0] ss:$16 sps:$4 sm:$0xff]   ;;  %v2567_v31 = vld [vmem:[#allocation5 + $0xe4] ss:$16 sps:$4 sm:$0xff]  }
  0xfd   :  { %2374 = vmatprep.subr.bf16.mxu1 %v2529_v32  ;;  %2396 = vmatprep.subr.bf16.mxu0 %v2530_v33  ;;  %v2570_v32 = vld [vmem:[#allocation5 + $0xec] ss:$16 sps:$4 sm:$0xff]   ;;  %v2573_v33 = vld [vmem:[#allocation5 + $0xc4] ss:$16 sps:$4 sm:$0xff]  }
 0x100   :  { %2375 = vmatpush3.bf16.msra.mxu1 %v2531_v34  ;;  %2397 = vmatpush3.bf16.msra.mxu0 %v2532_v35  ;;  %v2571_v34 = vld [vmem:[#allocation5 + $0xc0] ss:$16 sps:$4 sm:$0xff]   ;;  %v2579_v35 = vld [vmem:[#allocation5 + $0xa4] ss:$16 sps:$4 sm:$0xff]  }
 0x101   :  { %2376 = vmatprep.subr.bf16.mxu1 %v2533_v36  ;;  %2398 = vmatprep.subr.bf16.mxu0 %v2534_v37  ;;  %v2577_v36 = vld [vmem:[#allocation5 + $0xa0] ss:$16 sps:$4 sm:$0xff]   ;;  %v2585_v37 = vld [vmem:[#allocation5 + $0x84] ss:$16 sps:$4 sm:$0xff]  }
 0x104   :  { %2377 = vmatpush3.bf16.msra.mxu1 %v2535_v38  ;;  %2399 = vmatpush3.bf16.msra.mxu0 %v2536_v39  ;;  %v2583_v38 = vld [vmem:[#allocation5 + $0x80] ss:$16 sps:$4 sm:$0xff]   ;;  %v2591_v39 = vld [vmem:[#allocation5 + $0x64] ss:$16 sps:$4 sm:$0xff]  }
 0x105   :  { %2378 = vmatprep.subr.bf16.mxu1 %v2537_v40  ;;  %2400 = vmatprep.subr.bf16.mxu0 %v2538_v41  ;;  %v2589_v40 = vld [vmem:[#allocation5 + $0x60] ss:$16 sps:$4 sm:$0xff]   ;;  %v2597_v41 = vld [vmem:[#allocation5 + $0x44] ss:$16 sps:$4 sm:$0xff]  }
 0x108   :  { %2379 = vmatpush3.bf16.msra.mxu1 %v2539_v42  ;;  %2401 = vmatpush3.bf16.msra.mxu0 %v2540_v43  ;;  %v2595_v42 = vld [vmem:[#allocation5 + $0x40] ss:$16 sps:$4 sm:$0xff]   ;;  %v2603_v43 = vld [vmem:[#allocation5 + $0x24] ss:$16 sps:$4 sm:$0xff]  }
 0x109   :  { %2380 = vmatprep.subr.bf16.mxu1 %v2541_v44  ;;  %2402 = vmatprep.subr.bf16.mxu0 %v2542_v45  ;;  %v2601_v44 = vld [vmem:[#allocation5 + $0x20] ss:$16 sps:$4 sm:$0xff]   ;;  %v2609_v45 = vld [vmem:[#allocation5 + $0x4] ss:$16 sps:$4 sm:$0xff]  }
 0x10c   :  { %2381 = vmatpush3.bf16.msra.mxu1 %v2543_v46  ;;  %2403 = vmatpush3.bf16.msra.mxu0 %v2544_v47  ;;  %v2607_v46 = vld [vmem:[#allocation5] ss:$16 sps:$4 sm:$0xff]   ;;  %v2615_v47 = vld [vmem:[#allocation5 + $0x1e4] ss:$16 sps:$4 sm:$0xff]  }
 0x10d   :  { %2382 = vmatprep.subr.bf16.mxu1 %v2545_v48  ;;  %2404 = vmatprep.subr.bf16.mxu0 %v2546_v49  ;;  %v2613_v48 = vld [vmem:[#allocation5 + $0x1e0] ss:$16 sps:$4 sm:$0xff]   ;;  %v2621_v49 = vld [vmem:[#allocation5 + $0x1c4] ss:$16 sps:$4 sm:$0xff]  }
 0x110   :  { %2383 = vmatpush3.bf16.msra.mxu1 %v2547_v50  ;;  %2405 = vmatpush3.bf16.msra.mxu0 %v2548_v51  ;;  %v2619_v50 = vld [vmem:[#allocation5 + $0x1c0] ss:$16 sps:$4 sm:$0xff]   ;;  %v2627_v51 = vld [vmem:[#allocation5 + $0x1a4] ss:$16 sps:$4 sm:$0xff]  }
 0x111   :  { %2384 = vmatprep.subr.bf16.mxu1 %v2549_v52  ;;  %2406 = vmatprep.subr.bf16.mxu0 %v2550_v53  ;;  %v2625_v52 = vld [vmem:[#allocation5 + $0x1a0] ss:$16 sps:$4 sm:$0xff]   ;;  %v2633_v53 = vld [vmem:[#allocation5 + $0x184] ss:$16 sps:$4 sm:$0xff]  }
 0x114   :  { %2385 = vmatpush3.bf16.msra.mxu1 %v2551_v54  ;;  %2407 = vmatpush3.bf16.msra.mxu0 %v2552_v55  ;;  %v2631_v54 = vld [vmem:[#allocation5 + $0x180] ss:$16 sps:$4 sm:$0xff]   ;;  %v2639_v55 = vld [vmem:[#allocation5 + $0x164] ss:$16 sps:$4 sm:$0xff]  }
 0x115   :  { %1082 = vmatprep.subr.bf16.mxu1 %v2555_v56  ;;  %1525 = vmatprep.subr.bf16.mxu0 %v2567_v31  ;;  %v2637_v56 = vld [vmem:[#allocation5 + $0x160] ss:$16 sps:$4 sm:$0xff]   ;;  %v2616_v31 = vld [vmem:[#allocation5 + $0x1e8] ss:$16 sps:$4 sm:$0xff]  }
 0x1b7   :  { %v609_v0 = vpop.f32.mrf.mxu1  ;;  %v650_v2 = vpop.f32.mrf.mxu0 }
 0x1b8   :  { %v610_v3 = vadd.f32 %v609_v0, %v238_v60  ;;  %v651_v4 = vadd.f32 %v650_v2, %v246_v61  ;;  %v2643_v60 = vld [vmem:[#allocation5 + $0x140] ss:$16 sps:$4 sm:$0xff]  }
 0x1b9   :  { %v611_v5 = vpop.f32.mrf.mxu1  ;;  %v652_v6 = vpop.f32.mrf.mxu0 }
 0x1ba   :  { %v612_v7 = vadd.f32 %v611_v5, %v242_v62  ;;  %v653_v8 = vadd.f32 %v652_v6, %v250_v63  ;;  %v657_v9 = vmax.f32 %v610_v3, 0.0  ;;  %v659_v12 = vmax.f32 %v651_v4, 0.0  ;;  %v2199_v63 = vld [vmem:[%s3112_s6] ss:$0 sm:$0xff] }
 0x1bb   :  { %v613_v14 = vpop.f32.mrf.mxu1  ;;  %v654_v15 = vpop.f32.mrf.mxu0 }
 0x1bc   :  { %v658_v16 = vmax.f32 %v612_v7, 0.0  ;;  %v660_v17 = vmax.f32 %v653_v8, 0.0  ;;  %v661_v23 = vpack.c.bf16 %v657_v9, %v657_v9  ;;  %v663_v24 = vpack.c.bf16 %v659_v12, %v659_v12  ;;  %v2568_v15 = vld [vmem:[#allocation5 + $0xe8] ss:$16 sps:$4 sm:$0xff]  }
 0x1bd   :  { %v614_v18 = vpop.f32.mrf.mxu1  ;;  %v655_v19 = vpop.f32.mrf.mxu0 }
 0x1be   :  { %v662_v20 = vpack.c.bf16 %v658_v16, %v658_v16  ;;  %v664_v21 = vpack.c.bf16 %v660_v17, %v660_v17  ;;  %v2576_v17 = vld [vmem:[#allocation5 + $0xcc] ss:$16 sps:$4 sm:$0xff]   ;;  %v2574_v18 = vld [vmem:[#allocation5 + $0xc8] ss:$16 sps:$4 sm:$0xff]  }
 0x1bf   :  { %v2582_v19 = vld [vmem:[#allocation5 + $0xac] ss:$16 sps:$4 sm:$0xff]  }
 0x1c0   :  { %960 = vmatprep.mubr.bf16.mxu1 %v662_v20  ;;  %1000 = vmatprep.mubr.bf16.mxu0 %v664_v21  ;;  %v2580_v20 = vld [vmem:[#allocation5 + $0xa8] ss:$16 sps:$4 sm:$0xff]   ;;  %v2588_v21 = vld [vmem:[#allocation5 + $0x8c] ss:$16 sps:$4 sm:$0xff]  }
 0x1c1   :  { %961 = vmatmul.mubr.bf16.vlgmr.msra.gmra.mxu1 %v661_v23  ;;  %1001 = vmatmul.mubr.bf16.vlgmr.msra.gmra.mxu0 %v663_v24  ;;  %v2594_v23 = vld [vmem:[#allocation5 + $0x6c] ss:$16 sps:$4 sm:$0xff]   ;;  %v2592_v24 = vld [vmem:[#allocation5 + $0x68] ss:$16 sps:$4 sm:$0xff]  }
 0x1c2   :  { %1083 = vmatpush1.bf16.msra.mxu1 %v2553_v22  ;;  %1106 = vmatprep.mubr.bf16.mxu1 %v2828_v1  ;;  %v2564_v1 = vld [vmem:[%s3113_s7 + $0x4] ss:$8 sps:$4 sm:$0xff]  }
 0x1c3   :  { %1084 = vmatprep.subr.bf16.mxu1 %v2558_v25  ;;  %1526 = vmatpush1.bf16.msra.mxu0 %v2565_v30  ;;  %v2586_v22 = vld [vmem:[#allocation5 + $0x88] ss:$16 sps:$4 sm:$0xff]   ;;  %v2600_v25 = vld [vmem:[#allocation5 + $0x4c] ss:$16 sps:$4 sm:$0xff]  }
 0x1c4   :  { %1527 = vmatprep.subr.bf16.mxu0 %v2573_v33  ;;  %v2618_v30 = vld [vmem:[#allocation5 + $0x1ec] ss:$16 sps:$4 sm:$0xff]   ;;  %v2622_v33 = vld [vmem:[#allocation5 + $0x1c8] ss:$16 sps:$4 sm:$0xff]  }
 0x1c6   :  { %1085 = vmatpush1.bf16.msra.mxu1 %v2556_v26  ;;  %v2598_v26 = vld [vmem:[#allocation5 + $0x48] ss:$16 sps:$4 sm:$0xff]  }
 0x1c7   :  { %1086 = vmatprep.subr.bf16.mxu1 %v2561_v27  ;;  %1528 = vmatpush1.bf16.msra.mxu0 %v2571_v34  ;;  %v2606_v27 = vld [vmem:[#allocation5 + $0x2c] ss:$16 sps:$4 sm:$0xff]  }
 0x1c8   :  { %1529 = vmatprep.subr.bf16.mxu0 %v2579_v35  ;;  %v2630_v34 = vld [vmem:[#allocation5 + $0x1ac] ss:$16 sps:$4 sm:$0xff]   ;;  %v2628_v35 = vld [vmem:[#allocation5 + $0x1a8] ss:$16 sps:$4 sm:$0xff]  }
 0x1ca   :  { %1087 = vmatpush1.bf16.msra.mxu1 %v2559_v28  ;;  %v2604_v28 = vld [vmem:[#allocation5 + $0x28] ss:$16 sps:$4 sm:$0xff]  }
 0x1cb   :  { %1088 = vmatprep.subr.bf16.mxu1 %v2564_v1  ;;  %1530 = vmatpush1.bf16.msra.mxu0 %v2577_v36  ;;  %v2612_v1 = vld [vmem:[#allocation5 + $0xc] ss:$16 sps:$4 sm:$0xff]  }
 0x1cc   :  { %1531 = vmatprep.subr.bf16.mxu0 %v2585_v37  ;;  %v2636_v36 = vld [vmem:[#allocation5 + $0x18c] ss:$16 sps:$4 sm:$0xff]   ;;  %v2634_v37 = vld [vmem:[#allocation5 + $0x188] ss:$16 sps:$4 sm:$0xff]  }
 0x1ce   :  { %1089 = vmatpush1.bf16.msra.mxu1 %v2562_v29  ;;  %v2610_v29 = vld [vmem:[#allocation5 + $0x8] ss:$16 sps:$4 sm:$0xff]  }
 0x1cf   :  { %1566 = vmatprep.subr.bf16.mxu1 %v2570_v32  ;;  %1532 = vmatpush1.bf16.msra.mxu0 %v2583_v38  ;;  %v2624_v32 = vld [vmem:[#allocation5 + $0x1cc] ss:$16 sps:$4 sm:$0xff]  }
 0x1d0   :  { %1533 = vmatprep.subr.bf16.mxu0 %v2591_v39  ;;  %v2642_v38 = vld [vmem:[#allocation5 + $0x16c] ss:$16 sps:$4 sm:$0xff]   ;;  %v2640_v39 = vld [vmem:[#allocation5 + $0x168] ss:$16 sps:$4 sm:$0xff]  }
 0x1d3   :  { %1534 = vmatpush1.bf16.msra.mxu0 %v2589_v40  ;;  %v2648_v40 = vld [vmem:[#allocation5 + $0x14c] ss:$16 sps:$4 sm:$0xff]  }
 0x1d4   :  { %1535 = vmatprep.subr.bf16.mxu0 %v2597_v41  ;;  %v2646_v41 = vld [vmem:[#allocation5 + $0x148] ss:$16 sps:$4 sm:$0xff]  }
 0x1d7   :  { %1536 = vmatpush1.bf16.msra.mxu0 %v2595_v42  ;;  %v2651_v42 = vld [vmem:[#allocation5 + $0x124] ss:$16 sps:$4 sm:$0xff]  }
 0x1d8   :  { %1537 = vmatprep.subr.bf16.mxu0 %v2603_v43  ;;  %v2654_v43 = vld [vmem:[#allocation5 + $0x12c] ss:$16 sps:$4 sm:$0xff]  }
 0x1db   :  { %1538 = vmatpush1.bf16.msra.mxu0 %v2601_v44  ;;  %v2649_v44 = vld [vmem:[#allocation5 + $0x120] ss:$16 sps:$4 sm:$0xff]  }
 0x1dc   :  { %1539 = vmatprep.subr.bf16.mxu0 %v2609_v45  ;;  %v2652_v45 = vld [vmem:[#allocation5 + $0x128] ss:$16 sps:$4 sm:$0xff]  }
 0x1df   :  { %1540 = vmatpush1.bf16.msra.mxu0 %v2607_v46  ;;  %v2657_v46 = vld [vmem:[#allocation5 + $0x104] ss:$16 sps:$4 sm:$0xff]  }
 0x1e0   :  { %1541 = vmatprep.subr.bf16.mxu0 %v2615_v47  ;;  %v2660_v47 = vld [vmem:[#allocation5 + $0x10c] ss:$16 sps:$4 sm:$0xff]  }
 0x1e3   :  { %1542 = vmatpush2.bf16.msra.mxu0 %v2613_v48  ;;  %v2655_v48 = vld [vmem:[#allocation5 + $0x100] ss:$16 sps:$4 sm:$0xff]  }
 0x1e4   :  { %1543 = vmatprep.subr.bf16.mxu0 %v2621_v49  ;;  %v2658_v49 = vld [vmem:[#allocation5 + $0x108] ss:$16 sps:$4 sm:$0xff]  }
 0x1e7   :  { %1544 = vmatpush2.bf16.msra.mxu0 %v2619_v50  ;;  %v2663_v50 = vld [vmem:[#allocation7 + $0x74] ss:$8 sps:$4 sm:$0xff]  }
 0x1e8   :  { %1545 = vmatprep.subr.bf16.mxu0 %v2627_v51  ;;  %v2666_v51 = vld [vmem:[#allocation7 + $0x174] ss:$8 sps:$4 sm:$0xff]  }
 0x1eb   :  { %1546 = vmatpush2.bf16.msra.mxu0 %v2625_v52  ;;  %v1018_v52 = vld [vmem:[%s3114_s8] sm:$0x3] }
 0x1ec   :  { %1547 = vmatprep.subr.bf16.mxu0 %v2633_v53  ;;  %v1023_v53 = vrot.slane %v1018_v52, %v2940_v11 }
 0x1ef   :  { %1548 = vmatpush2.bf16.msra.mxu0 %v2631_v54  ;;  %v1027_v54 = vrot.slane %v1018_v52, %v2946_v13  ;;  %v2735_v52 = vld [vmem:[#allocation7 + $0xb4] ss:$8 sps:$4 sm:$0xff]  }
 0x1f0   :  { %1549 = vmatprep.subr.bf16.mxu0 %v2639_v55 }
 0x1f3   :  { %1550 = vmatpush2.bf16.msra.mxu0 %v2637_v56 }
 0x1f4   :  { %1551 = vmatprep.subr.bf16.mxu0 %v2645_v58 }
 0x1f7   :  { %1552 = vmatpush2.bf16.msra.mxu0 %v2643_v60 }
 0x1f8   :  { %1553 = vmatprep.subr.bf16.mxu0 %v2651_v42  ;;  %v2715_v42 = vld [vmem:[#allocation7 + $0xe0] ss:$8 sps:$4 sm:$0xff]  }
 0x1fb   :  { %1554 = vmatpush2.bf16.msra.mxu0 %v2649_v44  ;;  %v2723_v44 = vld [vmem:[#allocation7 + $0xd4] ss:$8 sps:$4 sm:$0xff]  }
 0x1fc   :  { %1555 = vmatprep.subr.bf16.mxu0 %v2657_v46  ;;  %v2721_v46 = vld [vmem:[#allocation7 + $0xd0] ss:$8 sps:$4 sm:$0xff]  }
 0x1ff   :  { %1556 = vmatpush2.bf16.msra.mxu0 %v2655_v48  ;;  %v2729_v48 = vld [vmem:[#allocation7 + $0xc4] ss:$8 sps:$4 sm:$0xff]  }
 0x200   :  { %2011 = vmatprep.subr.bf16.mxu0 %v2663_v50  ;;  %v2727_v50 = vld [vmem:[#allocation7 + $0xc0] ss:$8 sps:$4 sm:$0xff]  }
 0x281   :  { %v2386_v61 = vpop.f32.mrf.mxu1  ;;  %v2408_v62 = vpop.f32.mrf.mxu0 }
 0x283   :  { %v2387_v0 = vpop.f32.mrf.mxu1  ;;  %v2409_v2 = vpop.f32.mrf.mxu0 }
 0x284   :  { %v2388_v3 = vadd.f32 %v2387_v0, %v2386_v61  ;;  %v2410_v7 = vadd.f32 %v2409_v2, %v2408_v62 }
 0x285   :  { %v2389_v4 = vpop.f32.mrf.mxu1  ;;  %v2411_v5 = vpop.f32.mrf.mxu0 }
 0x286   :  { %v963_v6 = vadd.f32 %v2388_v3, %v2199_v63  ;;  %v2661_v3 = vld [vmem:[#allocation7 + $0x70] ss:$8 sps:$4 sm:$0xff]  }
 0x287   :  { %v2390_v8 = vpop.f32.mrf.mxu1  ;;  %v2412_v9 = vpop.f32.mrf.mxu0  ;;  %v2664_v4 = vld [vmem:[#allocation7 + $0x170] ss:$8 sps:$4 sm:$0xff]  }
 0x288   :  { %v1003_v12 = vadd.f32 %v2410_v7, %v963_v6  ;;  %v2669_v6 = vld [vmem:[#allocation7 + $0x64] ss:$8 sps:$4 sm:$0xff]   ;;  %v2667_v8 = vld [vmem:[#allocation7 + $0x60] ss:$8 sps:$4 sm:$0xff]  }
 0x289   :  { %v2672_v7 = vld [vmem:[#allocation7 + $0x164] ss:$8 sps:$4 sm:$0xff]   ;;  %v2670_v9 = vld [vmem:[#allocation7 + $0x160] ss:$8 sps:$4 sm:$0xff]  }
 0x28a   :  { %v1008_v14 = vmax.f32 %v1003_v12, 0.0  ;;  %v2675_v12 = vld [vmem:[#allocation7 + $0x54] ss:$8 sps:$4 sm:$0xff]  }
 0x28c   :  { %v1009_v16 = vpack.c.bf16 %v1008_v14, %v1008_v14  ;;  %v2678_v14 = vld [vmem:[#allocation7 + $0x154] ss:$8 sps:$4 sm:$0xff]  }
 0x28e   :  { %2240 = vmatmul.mubr.msk.bf16.vlgmr.msra.gmra.mxu1 %vm1070_vm1, %v1009_v16  ;;  %v2676_v16 = vld [vmem:[#allocation7 + $0x150] ss:$8 sps:$4 sm:$0xff]  }
 0x28f   :  { %1567 = vmatpush1.bf16.msra.mxu1 %v2568_v15  ;;  %v2673_v15 = vld [vmem:[#allocation7 + $0x50] ss:$8 sps:$4 sm:$0xff]  }
 0x290   :  { %1568 = vmatprep.subr.bf16.mxu1 %v2576_v17  ;;  %v2681_v17 = vld [vmem:[#allocation7 + $0x44] ss:$8 sps:$4 sm:$0xff]  }
 0x293   :  { %1569 = vmatpush1.bf16.msra.mxu1 %v2574_v18  ;;  %v2684_v18 = vld [vmem:[#allocation7 + $0x144] ss:$8 sps:$4 sm:$0xff]  }
 0x294   :  { %1570 = vmatprep.subr.bf16.mxu1 %v2582_v19  ;;  %v2679_v19 = vld [vmem:[#allocation7 + $0x40] ss:$8 sps:$4 sm:$0xff]  }
 0x297   :  { %1571 = vmatpush1.bf16.msra.mxu1 %v2580_v20  ;;  %v2682_v20 = vld [vmem:[#allocation7 + $0x140] ss:$8 sps:$4 sm:$0xff]  }
 0x298   :  { %1572 = vmatprep.subr.bf16.mxu1 %v2588_v21  ;;  %v2687_v21 = vld [vmem:[#allocation7 + $0x34] ss:$8 sps:$4 sm:$0xff]  }
 0x29b   :  { %1573 = vmatpush1.bf16.msra.mxu1 %v2586_v22  ;;  %v2690_v22 = vld [vmem:[#allocation7 + $0x134] ss:$8 sps:$4 sm:$0xff]  }
 0x29c   :  { %1574 = vmatprep.subr.bf16.mxu1 %v2594_v23  ;;  %v2685_v23 = vld [vmem:[#allocation7 + $0x30] ss:$8 sps:$4 sm:$0xff]  }
 0x29f   :  { %1575 = vmatpush1.bf16.msra.mxu1 %v2592_v24  ;;  %v2688_v24 = vld [vmem:[#allocation7 + $0x130] ss:$8 sps:$4 sm:$0xff]  }
 0x2a0   :  { %1576 = vmatprep.subr.bf16.mxu1 %v2600_v25  ;;  %v2693_v25 = vld [vmem:[#allocation7 + $0x24] ss:$8 sps:$4 sm:$0xff]  }
 0x2a3   :  { %1577 = vmatpush1.bf16.msra.mxu1 %v2598_v26  ;;  %v2696_v26 = vld [vmem:[#allocation7 + $0x124] ss:$8 sps:$4 sm:$0xff]  }
 0x2a4   :  { %1578 = vmatprep.subr.bf16.mxu1 %v2606_v27  ;;  %v2691_v27 = vld [vmem:[#allocation7 + $0x20] ss:$8 sps:$4 sm:$0xff]  }
 0x2a7   :  { %1579 = vmatpush1.bf16.msra.mxu1 %v2604_v28  ;;  %v2694_v28 = vld [vmem:[#allocation7 + $0x120] ss:$8 sps:$4 sm:$0xff]  }
 0x2a8   :  { %1580 = vmatprep.subr.bf16.mxu1 %v2612_v1  ;;  %v2699_v1 = vld [vmem:[#allocation7 + $0x14] ss:$8 sps:$4 sm:$0xff]  }
 0x2ab   :  { %1581 = vmatpush1.bf16.msra.mxu1 %v2610_v29  ;;  %v2702_v29 = vld [vmem:[#allocation7 + $0x114] ss:$8 sps:$4 sm:$0xff]  }
 0x2ac   :  { %1582 = vmatprep.subr.bf16.mxu1 %v2618_v30  ;;  %v2697_v30 = vld [vmem:[#allocation7 + $0x10] ss:$8 sps:$4 sm:$0xff]  }
 0x2af   :  { %1583 = vmatpush2.bf16.msra.mxu1 %v2616_v31  ;;  %v2700_v31 = vld [vmem:[#allocation7 + $0x110] ss:$8 sps:$4 sm:$0xff]  }
 0x2b0   :  { %1584 = vmatprep.subr.bf16.mxu1 %v2624_v32  ;;  %v2705_v32 = vld [vmem:[#allocation7 + $0x4] ss:$8 sps:$4 sm:$0xff]  }
 0x2b3   :  { %1585 = vmatpush2.bf16.msra.mxu1 %v2622_v33  ;;  %v2708_v33 = vld [vmem:[#allocation7 + $0x104] ss:$8 sps:$4 sm:$0xff]  }
 0x2b4   :  { %1586 = vmatprep.subr.bf16.mxu1 %v2630_v34  ;;  %v2703_v34 = vld [vmem:[#allocation7] ss:$8 sps:$4 sm:$0xff]  }
 0x2b7   :  { %1587 = vmatpush2.bf16.msra.mxu1 %v2628_v35  ;;  %v2706_v35 = vld [vmem:[#allocation7 + $0x100] ss:$8 sps:$4 sm:$0xff]  }
 0x2b8   :  { %1588 = vmatprep.subr.bf16.mxu1 %v2636_v36  ;;  %v2711_v36 = vld [vmem:[#allocation7 + $0xf4] ss:$8 sps:$4 sm:$0xff]  }
 0x2bb   :  { %1589 = vmatpush2.bf16.msra.mxu1 %v2634_v37  ;;  %v2714_v37 = vld [vmem:[#allocation7 + $0x1f4] ss:$8 sps:$4 sm:$0xff]  }
 0x2bc   :  { %1590 = vmatprep.subr.bf16.mxu1 %v2642_v38  ;;  %v2709_v38 = vld [vmem:[#allocation7 + $0xf0] ss:$8 sps:$4 sm:$0xff]  }
 0x2bf   :  { %1591 = vmatpush2.bf16.msra.mxu1 %v2640_v39  ;;  %v2712_v39 = vld [vmem:[#allocation7 + $0x1f0] ss:$8 sps:$4 sm:$0xff]  }
 0x2c0   :  { %1592 = vmatprep.subr.bf16.mxu1 %v2648_v40  ;;  %v2717_v40 = vld [vmem:[#allocation7 + $0xe4] ss:$8 sps:$4 sm:$0xff]  }
 0x2c3   :  { %1593 = vmatpush2.bf16.msra.mxu1 %v2646_v41  ;;  %v2720_v41 = vld [vmem:[#allocation7 + $0x1e4] ss:$8 sps:$4 sm:$0xff]  }
 0x2c4   :  { %1594 = vmatprep.subr.bf16.mxu1 %v2654_v43  ;;  %v2718_v43 = vld [vmem:[#allocation7 + $0x1e0] ss:$8 sps:$4 sm:$0xff]  }
 0x2c7   :  { %1595 = vmatpush2.bf16.msra.mxu1 %v2652_v45  ;;  %v2726_v45 = vld [vmem:[#allocation7 + $0x1d4] ss:$8 sps:$4 sm:$0xff]  }
 0x2c8   :  { %1596 = vmatprep.subr.bf16.mxu1 %v2660_v47  ;;  %v2724_v47 = vld [vmem:[#allocation7 + $0x1d0] ss:$8 sps:$4 sm:$0xff]  }
 0x2cb   :  { %1597 = vmatpush2.bf16.msra.mxu1 %v2658_v49  ;;  %v2732_v49 = vld [vmem:[#allocation7 + $0x1c4] ss:$8 sps:$4 sm:$0xff]  }
 0x2cc   :  { %2052 = vmatprep.subr.bf16.mxu1 %v2666_v51  ;;  %v2730_v51 = vld [vmem:[#allocation7 + $0x1c0] ss:$8 sps:$4 sm:$0xff]  }
 0x34e   :  { %v1108_v55 = vpop.f32.mrf.mxu1 }
 0x34f   :  { %v1109_v56 = vadd.f32 %v1108_v55, %v1023_v53  ;;  %v2738_v53 = vld [vmem:[#allocation7 + $0x1b4] ss:$8 sps:$4 sm:$0xff]   ;;  %v2736_v55 = vld [vmem:[#allocation7 + $0x1b0] ss:$8 sps:$4 sm:$0xff]  }
 0x350   :  { %v1110_v58 = vpop.f32.mrf.mxu1 }
 0x351   :  { %v1111_v60 = vadd.f32 %v1110_v58, %v1027_v54  ;;  %v1115_v61 = vmax.f32 %v1109_v56, 0.0  ;;  %v2733_v54 = vld [vmem:[#allocation7 + $0xb0] ss:$8 sps:$4 sm:$0xff]   ;;  %v2741_v56 = vld [vmem:[#allocation7 + $0xa4] ss:$8 sps:$4 sm:$0xff]  }
 0x352   :  { %v1112_v62 = vpop.f32.mrf.mxu1  ;;  %v2744_v58 = vld [vmem:[#allocation7 + $0x1a4] ss:$8 sps:$4 sm:$0xff]  }
 0x353   :  { %v1116_v63 = vmax.f32 %v1111_v60, 0.0  ;;  %v1117_v5 = vpack.c.bf16 %v1115_v61, %v1115_v61  ;;  %v2739_v60 = vld [vmem:[#allocation7 + $0xa0] ss:$8 sps:$4 sm:$0xff]   ;;  %v2747_v62 = vld [vmem:[#allocation7 + $0x94] ss:$8 sps:$4 sm:$0xff]  }
 0x354   :  { %v1113_v0 = vpop.f32.mrf.mxu1  ;;  %v2742_v61 = vld [vmem:[#allocation7 + $0x1a0] ss:$8 sps:$4 sm:$0xff]  }
 0x355   :  { %v1118_v2 = vpack.c.bf16 %v1116_v63, %v1116_v63  ;;  %v2750_v63 = vld [vmem:[#allocation7 + $0x194] ss:$8 sps:$4 sm:$0xff]   ;;  %v2745_v0 = vld [vmem:[#allocation7 + $0x90] ss:$8 sps:$4 sm:$0xff]  }
 0x357   :  { %1557 = vmatprep.mubr.bf16.mxu0 %v1118_v2  ;;  %1598 = vmatprep.mubr.bf16.mxu1 %v1118_v2  ;;  %v2748_v2 = vld [vmem:[#allocation7 + $0x190] ss:$8 sps:$4 sm:$0xff]  }
 0x358   :  { %1558 = vmatmul.mubr.bf16.vlgmr.msra.gmra.mxu0 %v1117_v5  ;;  %1599 = vmatmul.mubr.bf16.vlgmr.msra.gmra.mxu1 %v1117_v5  ;;  %v2751_v5 = vld [vmem:[#allocation7 + $0x80] ss:$8 sps:$4 sm:$0xff]  }
 0x359   :  { %2012 = vmatpush1.bf16.msra.mxu0 %v2661_v3  ;;  %2053 = vmatpush1.bf16.msra.mxu1 %v2664_v4  ;;  %v2753_v3 = vld [vmem:[#allocation7 + $0x84] ss:$8 sps:$4 sm:$0xff]  }
 0x35a   :  { %2013 = vmatprep.subr.bf16.mxu0 %v2669_v6  ;;  %2054 = vmatprep.subr.bf16.mxu1 %v2672_v7  ;;  %v2756_v4 = vld [vmem:[#allocation7 + $0x184] ss:$8 sps:$4 sm:$0xff]   ;;  %v2754_v6 = vld [vmem:[#allocation7 + $0x180] ss:$8 sps:$4 sm:$0xff]  }
 0x35b   :  { %v1183_v7 = vld [vmem:[%s3116_s10] sm:$0xf] }
 0x35d   :  { %2014 = vmatpush1.bf16.msra.mxu0 %v2667_v8  ;;  %2055 = vmatpush1.bf16.msra.mxu1 %v2670_v9  ;;  %v1188_v8 = vrot.slane %v1183_v7, %v2940_v11  ;;  %v1196_v9 = vrot.slane %v1183_v7, %v245_v57 }
 0x35e   :  { %2015 = vmatprep.subr.bf16.mxu0 %v2675_v12  ;;  %2056 = vmatprep.subr.bf16.mxu1 %v2678_v14  ;;  %v1192_v12 = vrot.slane %v1183_v7, %v2946_v13  ;;  %v1200_v14 = vrot.slane %v1183_v7, %v249_v59 }
 0x361   :  { %2016 = vmatpush1.bf16.msra.mxu0 %v2673_v15  ;;  %2057 = vmatpush1.bf16.msra.mxu1 %v2676_v16 }
 0x362   :  { %2017 = vmatprep.subr.bf16.mxu0 %v2681_v17  ;;  %2058 = vmatprep.subr.bf16.mxu1 %v2684_v18 }
 0x365   :  { %2018 = vmatpush1.bf16.msra.mxu0 %v2679_v19  ;;  %2059 = vmatpush1.bf16.msra.mxu1 %v2682_v20 }
 0x366   :  { %2019 = vmatprep.subr.bf16.mxu0 %v2687_v21  ;;  %2060 = vmatprep.subr.bf16.mxu1 %v2690_v22 }
 0x369   :  { %2020 = vmatpush1.bf16.msra.mxu0 %v2685_v23  ;;  %2061 = vmatpush1.bf16.msra.mxu1 %v2688_v24 }
 0x36a   :  { %2021 = vmatprep.subr.bf16.mxu0 %v2693_v25  ;;  %2062 = vmatprep.subr.bf16.mxu1 %v2696_v26 }
 0x36d   :  { %2022 = vmatpush1.bf16.msra.mxu0 %v2691_v27  ;;  %2063 = vmatpush1.bf16.msra.mxu1 %v2694_v28 }
 0x36e   :  { %2023 = vmatprep.subr.bf16.mxu0 %v2699_v1  ;;  %2064 = vmatprep.subr.bf16.mxu1 %v2702_v29 }
 0x371   :  { %2024 = vmatpush1.bf16.msra.mxu0 %v2697_v30  ;;  %2065 = vmatpush1.bf16.msra.mxu1 %v2700_v31  ;;  %v1679_v31 = vld [vmem:[%s3118_s12] sm:$0x3] }
 0x372   :  { %2025 = vmatprep.subr.bf16.mxu0 %v2705_v32  ;;  %2066 = vmatprep.subr.bf16.mxu1 %v2708_v33  ;;  %v1684_v32 = vrot.slane %v1679_v31, %v2940_v11  ;;  %v1688_v33 = vrot.slane %v1679_v31, %v2946_v13 }
 0x375   :  { %2026 = vmatpush1.bf16.msra.mxu0 %v2703_v34  ;;  %2067 = vmatpush1.bf16.msra.mxu1 %v2706_v35 }
 0x376   :  { %2027 = vmatprep.subr.bf16.mxu0 %v2711_v36  ;;  %2068 = vmatprep.subr.bf16.mxu1 %v2714_v37 }
 0x379   :  { %2028 = vmatpush2.bf16.msra.mxu0 %v2709_v38  ;;  %2069 = vmatpush2.bf16.msra.mxu1 %v2712_v39 }
 0x37a   :  { %2029 = vmatprep.subr.bf16.mxu0 %v2717_v40  ;;  %2070 = vmatprep.subr.bf16.mxu1 %v2720_v41 }
 0x37d   :  { %2030 = vmatpush2.bf16.msra.mxu0 %v2715_v42  ;;  %2071 = vmatpush2.bf16.msra.mxu1 %v2718_v43 }
 0x37e   :  { %2031 = vmatprep.subr.bf16.mxu0 %v2723_v44  ;;  %2072 = vmatprep.subr.bf16.mxu1 %v2726_v45 }
 0x381   :  { %2032 = vmatpush2.bf16.msra.mxu0 %v2721_v46  ;;  %2073 = vmatpush2.bf16.msra.mxu1 %v2724_v47  ;;  %v2099_v47 = vld [vmem:[%s3119_s13] sm:$0x3] }
 0x382   :  { %2033 = vmatprep.subr.bf16.mxu0 %v2729_v48  ;;  %2074 = vmatprep.subr.bf16.mxu1 %v2732_v49 }
 0x385   :  { %2034 = vmatpush2.bf16.msra.mxu0 %v2727_v50  ;;  %2075 = vmatpush2.bf16.msra.mxu1 %v2730_v51 }
 0x386   :  { %2035 = vmatprep.subr.bf16.mxu0 %v2735_v52  ;;  %2076 = vmatprep.subr.bf16.mxu1 %v2738_v53  ;;  %v2104_v52 = vrot.slane %v2099_v47, %v2940_v11  ;;  %v2108_v53 = vrot.slane %v2099_v47, %v2946_v13 }
 0x389   :  { %2036 = vmatpush2.bf16.msra.mxu0 %v2733_v54  ;;  %2077 = vmatpush2.bf16.msra.mxu1 %v2736_v55 }
 0x38a   :  { %2037 = vmatprep.subr.bf16.mxu0 %v2741_v56  ;;  %2078 = vmatprep.subr.bf16.mxu1 %v2744_v58 }
 0x38d   :  { %2038 = vmatpush2.bf16.msra.mxu0 %v2739_v60  ;;  %2079 = vmatpush2.bf16.msra.mxu1 %v2742_v61  ;;  %v2369_v60 = vld [vmem:[#allocation2] ss:$0 sm:$0xff] }
 0x38e   :  { %2039 = vmatprep.subr.bf16.mxu0 %v2747_v62  ;;  %2080 = vmatprep.subr.bf16.mxu1 %v2750_v63 }
 0x391   :  { %2040 = vmatpush2.bf16.msra.mxu0 %v2745_v0  ;;  %2081 = vmatpush2.bf16.msra.mxu1 %v2748_v2 }
 0x392   :  { %2041 = vmatprep.subr.bf16.mxu0 %v2753_v3  ;;  %2082 = vmatprep.subr.bf16.mxu1 %v2756_v4 }
 0x395   :  { %2042 = vmatpush2.bf16.msra.mxu0 %v2751_v5  ;;  %2083 = vmatpush2.bf16.msra.mxu1 %v2754_v6 }
 0x418   :  { %v1559_v15 = vpop.f32.mrf.mxu0  ;;  %v1600_v16 = vpop.f32.mrf.mxu1 }
 0x419   :  { %v1560_v17 = vadd.f32 %v1559_v15, %v1188_v8  ;;  %v1601_v18 = vadd.f32 %v1600_v16, %v1196_v9 }
 0x41a   :  { %v1561_v19 = vpop.f32.mrf.mxu0  ;;  %v1602_v20 = vpop.f32.mrf.mxu1 }
 0x41b   :  { %v1562_v21 = vadd.f32 %v1561_v19, %v1192_v12  ;;  %v1603_v22 = vadd.f32 %v1602_v20, %v1200_v14  ;;  %v1607_v23 = vmax.f32 %v1560_v17, 0.0  ;;  %v1609_v24 = vmax.f32 %v1601_v18, 0.0 }
 0x41c   :  { %v1563_v25 = vpop.f32.mrf.mxu0  ;;  %v1604_v26 = vpop.f32.mrf.mxu1 }
 0x41d   :  { %v1608_v27 = vmax.f32 %v1562_v21, 0.0  ;;  %v1610_v28 = vmax.f32 %v1603_v22, 0.0  ;;  %v1611_v10 = vpack.c.bf16 %v1607_v23, %v1607_v23  ;;  %v1613_v59 = vpack.c.bf16 %v1609_v24, %v1609_v24 }
 0x41e   :  { %v1564_v57 = vpop.f32.mrf.mxu0  ;;  %v1605_v1 = vpop.f32.mrf.mxu1 }
 0x41f   :  { %v1612_v29 = vpack.c.bf16 %v1608_v27, %v1608_v27  ;;  %v1614_v30 = vpack.c.bf16 %v1610_v28, %v1610_v28 }
 0x421   :  { %2043 = vmatprep.mubr.bf16.mxu0 %v1612_v29  ;;  %2084 = vmatprep.mubr.bf16.mxu1 %v1614_v30 }
 0x422   :  { %2044 = vmatmul.mubr.bf16.vlgmr.msra.gmra.mxu0 %v1611_v10  ;;  %2085 = vmatmul.mubr.bf16.vlgmr.msra.gmra.mxu1 %v1613_v59 }
 0x4e2   :  { %v2045_v34 = vpop.f32.mrf.mxu0  ;;  %v2086_v35 = vpop.f32.mrf.mxu1 }
 0x4e3   :  { %v2046_v36 = vadd.f32 %v2045_v34, %v1684_v32 }
 0x4e4   :  { %v2047_v37 = vpop.f32.mrf.mxu0  ;;  %v2088_v38 = vpop.f32.mrf.mxu1 }
 0x4e5   :  { %v2087_v39 = vadd.f32 %v2086_v35, %v2046_v36  ;;  %v2048_v40 = vadd.f32 %v2047_v37, %v1688_v33 }
 0x4e6   :  { %v2049_v41 = vpop.f32.mrf.mxu0  ;;  %v2090_v42 = vpop.f32.mrf.mxu1 }
 0x4e7   :  { %v2093_v43 = vmax.f32 %v2087_v39, 0.0  ;;  %v2089_v44 = vadd.f32 %v2088_v38, %v2048_v40 }
 0x4e8   :  { %v2050_v45 = vpop.f32.mrf.mxu0  ;;  %v2091_v46 = vpop.f32.mrf.mxu1 }
 0x4e9   :  { %v2095_v48 = vpack.c.bf16 %v2093_v43, %v2093_v43  ;;  %v2094_v49 = vmax.f32 %v2089_v44, 0.0 }
 0x4eb   :  { %v2097_v50 = vunpack.c.l.bf16 %v2095_v48  ;;  %v2096_v51 = vpack.c.bf16 %v2094_v49, %v2094_v49 }
 0x4ed   :  { %v2098_v54 = vunpack.c.l.bf16 %v2096_v51  ;;  %v2111_v55 = vmul.f32 %v2104_v52, %v2097_v50 }
 0x4ef   :  { %v2112_v56 = vmul.f32 %v2108_v53, %v2098_v54 }
 0x4f1   :  { %v2113_v58 = vadd.f32 %v2112_v56, %v2111_v55 }
 0x4f3   :  { %2114 = vadd.xlane.f32.xlu0 %v2113_v58 }
 0x57c   :  { %v2115_v61 = vpop.xlane.xlu0 %2114 }
 0x57d   :  { %v2123_v62 = vadd.f32 %v2369_v60, %v2115_v61 }
 0x57f   :  { %2125 = vst.msk [vmem:[%s3121_s15] sm:$0xff] %vm2124_vm2, %v2123_v62 }
 0x580   :  { %2130 = vsyncpa [#allocation4], 1 }
 0x581   :  { %2131 = vsyncpa [#allocation6], 1 }

</bundles_post_ra>
